<compile_context>
chip_gen: v7x
topology: tpu7x:2x2x1
jax: 0.10.0
libtpu: 0.0.40
codegen_flags: <defaults>
</compile_context>

<pallas_src>
import functools
import math

import jax
import jax.numpy as jnp
from jax.experimental import pallas as pl
from jax.experimental.pallas import tpu as pltpu

LN_EPS = 1e-5  # nn.LayerNorm default eps


def _mlp_fused_kernel(*refs, layer_cfgs):
    """Whole MLP for one batch tile; activations never leave VMEM.

    refs = (x_ref, *param_refs, o_ref).  param_refs holds, per layer,
    (w, b) and additionally (gamma, beta) when that layer has LayerNorm.
    layer_cfgs is a static tuple of (relu, ln) flags.
    """
    x_ref = refs[0]
    o_ref = refs[-1]
    params = refs[1:-1]

    h = x_ref[...]  # native dtype; no forced upcast (MXU handles bf16/f32)
    idx = 0
    for relu, ln in layer_cfgs:
        w_ref, b_ref = params[idx], params[idx + 1]
        idx += 2
        w = w_ref[...]
        lhs = h if h.dtype == w.dtype else h.astype(w.dtype)
        # MXU matmul with f32 accumulation; operands stay in native dtype.
        y = jnp.dot(lhs, w, preferred_element_type=jnp.float32)
        y = y + b_ref[...].astype(jnp.float32)
        if relu:
            y = jnp.maximum(y, 0.0)
        if ln:
            g_ref, beta_ref = params[idx], params[idx + 1]
            idx += 2
            n = y.shape[-1]
            inv_n = 1.0 / n
            # Single-pass statistics: sum and sum-of-squares in one sweep.
            s1 = jnp.sum(y, axis=-1, keepdims=True)
            s2 = jnp.sum(y * y, axis=-1, keepdims=True)
            mean = s1 * inv_n
            var = jnp.maximum(s2 * inv_n - mean * mean, 0.0)
            y = (y - mean) * jax.lax.rsqrt(var + LN_EPS)
            y = (y * g_ref[...].astype(jnp.float32)
                 + beta_ref[...].astype(jnp.float32))
        h = y
    o_ref[...] = h.astype(o_ref.dtype)


def mlp_forward(x, params, *, tile_b=128):
    """Forward pass of MLPWithMaybeLayerNorm as one fused Pallas kernel.

    x: [batch, input_size].  params: list of dicts with keys
    w [in,out], b [1,out], gamma [1,out], beta [1,out], relu, ln.
    """
    B, in_dim = x.shape
    out_dim = params[-1]["w"].shape[1]
    out_dtype = x.dtype

    # Batch tile: MXU-friendly row count, multiple of 8 (sublane tiling) when
    # tiling; keep >=2 grid steps when B allows so the pipeline overlaps DMA
    # with compute and v7x can use both TensorCores on the "parallel" axis.
    tile_b = min(tile_b, B)
    if tile_b >= 8:
        tile_b -= tile_b % 8
    tile_b = max(tile_b, 1)
    num_tiles = pl.cdiv(B, tile_b)
    padded_b = num_tiles * tile_b
    if padded_b != B:
        # Zero-pad extra rows; zeros flow safely through ReLU/LayerNorm
        # (var=0 -> rsqrt(eps) finite, no NaN/inf) and are sliced off below.
        x = jnp.pad(x, ((0, padded_b - B), (0, 0)))

    const_map = lambda i: (0, 0)          # grid-invariant params: resident in VMEM
    x_spec = pl.BlockSpec((tile_b, in_dim), lambda i: (i, 0))

    in_specs = [x_spec]
    flat_params = []
    layer_cfgs = []
    total_flops = 0
    param_bytes = 0
    n_ln = 0
    for p in params:
        w, b = p["w"], p["b"]
        k_dim, n_dim = w.shape
        flat_params += [w, b]
        in_specs += [pl.BlockSpec((k_dim, n_dim), const_map),
                     pl.BlockSpec((1, n_dim), const_map)]
        if p["ln"]:
            flat_params += [p["gamma"], p["beta"]]
            in_specs += [pl.BlockSpec((1, n_dim), const_map),
                         pl.BlockSpec((1, n_dim), const_map)]
            n_ln += 1
        layer_cfgs.append((bool(p["relu"]), bool(p["ln"])))
        total_flops += 2 * padded_b * k_dim * n_dim
        param_bytes += sum(int(a.size) * a.dtype.itemsize for a in (w, b))

    cost = pl.CostEstimate(
        flops=int(total_flops),
        transcendentals=int(padded_b * n_ln),  # one rsqrt per row per LN
        bytes_accessed=int(x.size * x.dtype.itemsize
                           + padded_b * out_dim * jnp.dtype(out_dtype).itemsize
                           + param_bytes),
    )

    kernel = functools.partial(_mlp_fused_kernel, layer_cfgs=tuple(layer_cfgs))

    out = pl.pallas_call(
        kernel,
        out_shape=jax.ShapeDtypeStruct((padded_b, out_dim), out_dtype),
        grid_spec=pltpu.PrefetchScalarGridSpec(
            num_scalar_prefetch=0,
            grid=(num_tiles,),
            in_specs=in_specs,
            out_specs=pl.BlockSpec((tile_b, out_dim), lambda i: (i, 0)),
        ),
        compiler_params=pltpu.CompilerParams(
            dimension_semantics=("parallel",)),
        cost_estimate=cost,
    )(x, *flat_params)

    return out[:B] if padded_b != B else out


def init_mlp_params(key, input_size, hidden_sizes, output_size,
                    use_layer_norm, dtype=jnp.float32):
    """Deterministic init mirroring nn.Linear default (uniform ±1/sqrt(fan_in)).

    Weights are stored as [in, out] (transposed from PyTorch's [out, in])."""
    params = []
    dims = [input_size] + list(hidden_sizes) + [output_size]
    for li in range(len(dims) - 1):
        fan_in, fan_out = dims[li], dims[li + 1]
        key, kw, kb = jax.random.split(key, 3)
        bound = 1.0 / math.sqrt(fan_in)
        w = jax.random.uniform(kw, (fan_in, fan_out), dtype, -bound, bound)
        b = jax.random.uniform(kb, (1, fan_out), dtype, -bound, bound)
        is_hidden = li < len(hidden_sizes)
        has_ln = use_layer_norm and is_hidden
        gamma = jnp.ones((1, fan_out), dtype)   # nn.LayerNorm default init
        beta = jnp.zeros((1, fan_out), dtype)
        params.append(dict(w=w, b=b, gamma=gamma, beta=beta,
                           relu=is_hidden, ln=has_ln))
    return params


def mlp_forward_ref(x, params):
    """Pure-JAX reference (matches nn.Sequential: Linear -> ReLU -> LayerNorm)."""
    h = x
    for p in params:
        y = h @ p["w"] + p["b"]
        if p["relu"]:
            y = jnp.maximum(y, 0.0)
        if p["ln"]:
            mean = jnp.mean(y, axis=-1, keepdims=True)
            var = jnp.mean(jnp.square(y - mean), axis=-1, keepdims=True)
            y = (y - mean) * jax.lax.rsqrt(var + LN_EPS)
            y = y * p["gamma"] + p["beta"]
        h = y
    return h


if __name__ == "__main__":
    # Small but lane-dense shapes (multiples of 128) so output stores are
    # unmasked and the batch grid has 2 "parallel" steps (tile_b=128, B=256).
    batch = 256
    input_size = 128
    hidden_sizes = [256, 128]
    output_size = 128
    use_layer_norm = True

    key = jax.random.PRNGKey(0)
    key, kx = jax.random.split(key)
    x = jax.random.normal(kx, (batch, input_size), jnp.float32)

    params = init_mlp_params(key, input_size, hidden_sizes, output_size,
                             use_layer_norm)

    out = mlp_forward(x, params, tile_b=128)
    out = jax.block_until_ready(out)

    ref = mlp_forward_ref(x, params)
    assert out.shape == (batch, output_size), out.shape
    err = float(jnp.max(jnp.abs(out - ref)))
    assert jnp.allclose(out, ref, atol=1e-4, rtol=1e-4), err

    print("KERNEL_OK")
</pallas_src>

<mosaic_0001>
module attributes {stable_mosaic.version = 11 : i64} {
  func.func @_mlp_fused_kernel(%arg0: i32, %arg1: memref<128x128xf32, #tpu.memory_space<vmem>>, %arg2: memref<128x256xf32, #tpu.memory_space<vmem>>, %arg3: memref<1x256xf32, #tpu.memory_space<vmem>>, %arg4: memref<1x256xf32, #tpu.memory_space<vmem>>, %arg5: memref<1x256xf32, #tpu.memory_space<vmem>>, %arg6: memref<256x128xf32, #tpu.memory_space<vmem>>, %arg7: memref<1x128xf32, #tpu.memory_space<vmem>>, %arg8: memref<1x128xf32, #tpu.memory_space<vmem>>, %arg9: memref<1x128xf32, #tpu.memory_space<vmem>>, %arg10: memref<128x128xf32, #tpu.memory_space<vmem>>, %arg11: memref<1x128xf32, #tpu.memory_space<vmem>>, %arg12: memref<128x128xf32, #tpu.memory_space<vmem>>) attributes {dimension_semantics = [#tpu.dimension_semantics<parallel>], iteration_bounds = array<i64: 2>, scalar_prefetch = 0 : i64, scratch_operands = 0 : i64, tpu.core_type = #tpu.core_type<tc>, window_params = [{transform_indices = @transform_0, window_bounds = array<i64: 128, 128>}, {pipeline_mode = #tpu.pipeline_mode<synchronous>, transform_indices = @transform_1, window_bounds = array<i64: 128, 256>}, {pipeline_mode = #tpu.pipeline_mode<synchronous>, transform_indices = @transform_2, window_bounds = array<i64: 1, 256>}, {pipeline_mode = #tpu.pipeline_mode<synchronous>, transform_indices = @transform_3, window_bounds = array<i64: 1, 256>}, {pipeline_mode = #tpu.pipeline_mode<synchronous>, transform_indices = @transform_4, window_bounds = array<i64: 1, 256>}, {pipeline_mode = #tpu.pipeline_mode<synchronous>, transform_indices = @transform_5, window_bounds = array<i64: 256, 128>}, {pipeline_mode = #tpu.pipeline_mode<synchronous>, transform_indices = @transform_6, window_bounds = array<i64: 1, 128>}, {pipeline_mode = #tpu.pipeline_mode<synchronous>, transform_indices = @transform_7, window_bounds = array<i64: 1, 128>}, {pipeline_mode = #tpu.pipeline_mode<synchronous>, transform_indices = @transform_8, window_bounds = array<i64: 1, 128>}, {pipeline_mode = #tpu.pipeline_mode<synchronous>, transform_indices = @transform_9, window_bounds = array<i64: 128, 128>}, {pipeline_mode = #tpu.pipeline_mode<synchronous>, transform_indices = @transform_10, window_bounds = array<i64: 1, 128>}, {transform_indices = @transform_11, window_bounds = array<i64: 128, 128>}]} {
    %c0 = arith.constant 0 : index
    %c0_0 = arith.constant 0 : index
    %0 = vector.load %arg1[%c0, %c0_0] : memref<128x128xf32, #tpu.memory_space<vmem>>, vector<128x128xf32>
    %c0_1 = arith.constant 0 : index
    %c0_2 = arith.constant 0 : index
    %1 = vector.load %arg2[%c0_1, %c0_2] : memref<128x256xf32, #tpu.memory_space<vmem>>, vector<128x256xf32>
    %cst = arith.constant dense<0.000000e+00> : vector<128x256xf32>
    %2 = tpu.matmul %0, %1, %cst {dimension_numbers = #tpu.dot_dimension_numbers<[1], [0], [0], [1], [0, 0, 1, 1], [], []>} : vector<128x128xf32>, vector<128x256xf32>, vector<128x256xf32> -> vector<128x256xf32>
    %c0_3 = arith.constant 0 : index
    %c0_4 = arith.constant 0 : index
    %3 = vector.load %arg3[%c0_3, %c0_4] : memref<1x256xf32, #tpu.memory_space<vmem>>, vector<1x256xf32>
    %4 = vector.broadcast %3 : vector<1x256xf32> to vector<128x256xf32>
    %5 = arith.addf %2, %4 : vector<128x256xf32>
    %cst_5 = arith.constant 0.000000e+00 : f32
    %6 = vector.broadcast %cst_5 : f32 to vector<128x256xf32>
    %7 = arith.maximumf %5, %6 : vector<128x256xf32>
    %cst_6 = arith.constant dense<0.000000e+00> : vector<128xf32>
    %8 = vector.multi_reduction <add>, %7, %cst_6 [1] : vector<128x256xf32> to vector<128xf32>
    %9 = vector.shape_cast %8 : vector<128xf32> to vector<128x1xf32>
    %10 = arith.mulf %7, %7 : vector<128x256xf32>
    %cst_7 = arith.constant dense<0.000000e+00> : vector<128xf32>
    %11 = vector.multi_reduction <add>, %10, %cst_7 [1] : vector<128x256xf32> to vector<128xf32>
    %12 = vector.shape_cast %11 : vector<128xf32> to vector<128x1xf32>
    %cst_8 = arith.constant 3.906250e-03 : f32
    %13 = vector.broadcast %cst_8 : f32 to vector<128x1xf32>
    %14 = arith.mulf %9, %13 : vector<128x1xf32>
    %cst_9 = arith.constant 3.906250e-03 : f32
    %15 = vector.broadcast %cst_9 : f32 to vector<128x1xf32>
    %16 = arith.mulf %12, %15 : vector<128x1xf32>
    %17 = arith.mulf %14, %14 : vector<128x1xf32>
    %18 = arith.subf %16, %17 : vector<128x1xf32>
    %cst_10 = arith.constant 0.000000e+00 : f32
    %19 = vector.broadcast %cst_10 : f32 to vector<128x1xf32>
    %20 = arith.maximumf %18, %19 : vector<128x1xf32>
    %21 = vector.broadcast %14 : vector<128x1xf32> to vector<128x256xf32>
    %22 = arith.subf %7, %21 : vector<128x256xf32>
    %cst_11 = arith.constant 9.99999974E-6 : f32
    %23 = vector.broadcast %cst_11 : f32 to vector<128x1xf32>
    %24 = arith.addf %20, %23 : vector<128x1xf32>
    %25 = math.rsqrt %24 : vector<128x1xf32>
    %26 = vector.broadcast %25 : vector<128x1xf32> to vector<128x256xf32>
    %27 = arith.mulf %22, %26 : vector<128x256xf32>
    %c0_12 = arith.constant 0 : index
    %c0_13 = arith.constant 0 : index
    %28 = vector.load %arg4[%c0_12, %c0_13] : memref<1x256xf32, #tpu.memory_space<vmem>>, vector<1x256xf32>
    %29 = vector.broadcast %28 : vector<1x256xf32> to vector<128x256xf32>
    %30 = arith.mulf %27, %29 : vector<128x256xf32>
    %c0_14 = arith.constant 0 : index
    %c0_15 = arith.constant 0 : index
    %31 = vector.load %arg5[%c0_14, %c0_15] : memref<1x256xf32, #tpu.memory_space<vmem>>, vector<1x256xf32>
    %32 = vector.broadcast %31 : vector<1x256xf32> to vector<128x256xf32>
    %33 = arith.addf %30, %32 : vector<128x256xf32>
    %c0_16 = arith.constant 0 : index
    %c0_17 = arith.constant 0 : index
    %34 = vector.load %arg6[%c0_16, %c0_17] : memref<256x128xf32, #tpu.memory_space<vmem>>, vector<256x128xf32>
    %cst_18 = arith.constant dense<0.000000e+00> : vector<128x128xf32>
    %35 = tpu.matmul %33, %34, %cst_18 {dimension_numbers = #tpu.dot_dimension_numbers<[1], [0], [0], [1], [0, 0, 1, 1], [], []>} : vector<128x256xf32>, vector<256x128xf32>, vector<128x128xf32> -> vector<128x128xf32>
    %c0_19 = arith.constant 0 : index
    %c0_20 = arith.constant 0 : index
    %36 = vector.load %arg7[%c0_19, %c0_20] : memref<1x128xf32, #tpu.memory_space<vmem>>, vector<1x128xf32>
    %37 = vector.broadcast %36 : vector<1x128xf32> to vector<128x128xf32>
    %38 = arith.addf %35, %37 : vector<128x128xf32>
    %cst_21 = arith.constant 0.000000e+00 : f32
    %39 = vector.broadcast %cst_21 : f32 to vector<128x128xf32>
    %40 = arith.maximumf %38, %39 : vector<128x128xf32>
    %cst_22 = arith.constant dense<0.000000e+00> : vector<128xf32>
    %41 = vector.multi_reduction <add>, %40, %cst_22 [1] : vector<128x128xf32> to vector<128xf32>
    %42 = vector.shape_cast %41 : vector<128xf32> to vector<128x1xf32>
    %43 = arith.mulf %40, %40 : vector<128x128xf32>
    %cst_23 = arith.constant dense<0.000000e+00> : vector<128xf32>
    %44 = vector.multi_reduction <add>, %43, %cst_23 [1] : vector<128x128xf32> to vector<128xf32>
    %45 = vector.shape_cast %44 : vector<128xf32> to vector<128x1xf32>
    %cst_24 = arith.constant 7.812500e-03 : f32
    %46 = vector.broadcast %cst_24 : f32 to vector<128x1xf32>
    %47 = arith.mulf %42, %46 : vector<128x1xf32>
    %cst_25 = arith.constant 7.812500e-03 : f32
    %48 = vector.broadcast %cst_25 : f32 to vector<128x1xf32>
    %49 = arith.mulf %45, %48 : vector<128x1xf32>
    %50 = arith.mulf %47, %47 : vector<128x1xf32>
    %51 = arith.subf %49, %50 : vector<128x1xf32>
    %cst_26 = arith.constant 0.000000e+00 : f32
    %52 = vector.broadcast %cst_26 : f32 to vector<128x1xf32>
    %53 = arith.maximumf %51, %52 : vector<128x1xf32>
    %54 = vector.broadcast %47 : vector<128x1xf32> to vector<128x128xf32>
    %55 = arith.subf %40, %54 : vector<128x128xf32>
    %cst_27 = arith.constant 9.99999974E-6 : f32
    %56 = vector.broadcast %cst_27 : f32 to vector<128x1xf32>
    %57 = arith.addf %53, %56 : vector<128x1xf32>
    %58 = math.rsqrt %57 : vector<128x1xf32>
    %59 = vector.broadcast %58 : vector<128x1xf32> to vector<128x128xf32>
    %60 = arith.mulf %55, %59 : vector<128x128xf32>
    %c0_28 = arith.constant 0 : index
    %c0_29 = arith.constant 0 : index
    %61 = vector.load %arg8[%c0_28, %c0_29] : memref<1x128xf32, #tpu.memory_space<vmem>>, vector<1x128xf32>
    %62 = vector.broadcast %61 : vector<1x128xf32> to vector<128x128xf32>
    %63 = arith.mulf %60, %62 : vector<128x128xf32>
    %c0_30 = arith.constant 0 : index
    %c0_31 = arith.constant 0 : index
    %64 = vector.load %arg9[%c0_30, %c0_31] : memref<1x128xf32, #tpu.memory_space<vmem>>, vector<1x128xf32>
    %65 = vector.broadcast %64 : vector<1x128xf32> to vector<128x128xf32>
    %66 = arith.addf %63, %65 : vector<128x128xf32>
    %c0_32 = arith.constant 0 : index
    %c0_33 = arith.constant 0 : index
    %67 = vector.load %arg10[%c0_32, %c0_33] : memref<128x128xf32, #tpu.memory_space<vmem>>, vector<128x128xf32>
    %cst_34 = arith.constant dense<0.000000e+00> : vector<128x128xf32>
    %68 = tpu.matmul %66, %67, %cst_34 {dimension_numbers = #tpu.dot_dimension_numbers<[1], [0], [0], [1], [0, 0, 1, 1], [], []>} : vector<128x128xf32>, vector<128x128xf32>, vector<128x128xf32> -> vector<128x128xf32>
    %c0_35 = arith.constant 0 : index
    %c0_36 = arith.constant 0 : index
    %69 = vector.load %arg11[%c0_35, %c0_36] : memref<1x128xf32, #tpu.memory_space<vmem>>, vector<1x128xf32>
    %70 = vector.broadcast %69 : vector<1x128xf32> to vector<128x128xf32>
    %71 = arith.addf %68, %70 : vector<128x128xf32>
    %c0_37 = arith.constant 0 : index
    %c0_38 = arith.constant 0 : index
    %72 = vector.load %arg12[%c0_37, %c0_38] : memref<128x128xf32, #tpu.memory_space<vmem>>, vector<128x128xf32>
    tpu.vector_store %arg12[%c0_37, %c0_38], %71 {strides = array<i32>} : memref<128x128xf32, #tpu.memory_space<vmem>>, vector<128x128xf32>,
    return
  }
  func.func @transform_0(%arg0: i32) -> (i32, i32) {
    %c0_i32 = arith.constant 0 : i32
    %c0_i32_0 = arith.constant 0 : i32
    return %arg0, %c0_i32 : i32, i32
  }
  func.func @transform_1(%arg0: i32) -> (i32, i32) {
    %c0_i32 = arith.constant 0 : i32
    %c0_i32_0 = arith.constant 0 : i32
    %c0_i32_1 = arith.constant 0 : i32
    return %c0_i32, %c0_i32_0 : i32, i32
  }
  func.func @transform_2(%arg0: i32) -> (i32, i32) {
    %c0_i32 = arith.constant 0 : i32
    %c0_i32_0 = arith.constant 0 : i32
    %c0_i32_1 = arith.constant 0 : i32
    return %c0_i32, %c0_i32_0 : i32, i32
  }
  func.func @transform_3(%arg0: i32) -> (i32, i32) {
    %c0_i32 = arith.constant 0 : i32
    %c0_i32_0 = arith.constant 0 : i32
    %c0_i32_1 = arith.constant 0 : i32
    return %c0_i32, %c0_i32_0 : i32, i32
  }
  func.func @transform_4(%arg0: i32) -> (i32, i32) {
    %c0_i32 = arith.constant 0 : i32
    %c0_i32_0 = arith.constant 0 : i32
    %c0_i32_1 = arith.constant 0 : i32
    return %c0_i32, %c0_i32_0 : i32, i32
  }
  func.func @transform_5(%arg0: i32) -> (i32, i32) {
    %c0_i32 = arith.constant 0 : i32
    %c0_i32_0 = arith.constant 0 : i32
    %c0_i32_1 = arith.constant 0 : i32
    return %c0_i32, %c0_i32_0 : i32, i32
  }
  func.func @transform_6(%arg0: i32) -> (i32, i32) {
    %c0_i32 = arith.constant 0 : i32
    %c0_i32_0 = arith.constant 0 : i32
    %c0_i32_1 = arith.constant 0 : i32
    return %c0_i32, %c0_i32_0 : i32, i32
  }
  func.func @transform_7(%arg0: i32) -> (i32, i32) {
    %c0_i32 = arith.constant 0 : i32
    %c0_i32_0 = arith.constant 0 : i32
    %c0_i32_1 = arith.constant 0 : i32
    return %c0_i32, %c0_i32_0 : i32, i32
  }
  func.func @transform_8(%arg0: i32) -> (i32, i32) {
    %c0_i32 = arith.constant 0 : i32
    %c0_i32_0 = arith.constant 0 : i32
    %c0_i32_1 = arith.constant 0 : i32
    return %c0_i32, %c0_i32_0 : i32, i32
  }
  func.func @transform_9(%arg0: i32) -> (i32, i32) {
    %c0_i32 = arith.constant 0 : i32
    %c0_i32_0 = arith.constant 0 : i32
    %c0_i32_1 = arith.constant 0 : i32
    return %c0_i32, %c0_i32_0 : i32, i32
  }
  func.func @transform_10(%arg0: i32) -> (i32, i32) {
    %c0_i32 = arith.constant 0 : i32
    %c0_i32_0 = arith.constant 0 : i32
    %c0_i32_1 = arith.constant 0 : i32
    return %c0_i32, %c0_i32_0 : i32, i32
  }
  func.func @transform_11(%arg0: i32) -> (i32, i32) {
    %c0_i32 = arith.constant 0 : i32
    %c0_i32_0 = arith.constant 0 : i32
    return %arg0, %c0_i32 : i32, i32
  }
}

</mosaic_0001>

<bundles_post_ra>
// kernel: tpu_custom_call.1
= control target key start
LH: loop header
LB: loop body
LE: loop exit
PB: predicated region body
PF: predicated region fallthrough
CT: control target
= control target key end

     0   :  { %s3521_s0 = inlined_call_operand.hbm [shape: f32[256,128], index: 0, kind: input, shape index: {}]   ;;  %s3522_s1 = inlined_call_operand.hbm [shape: f32[128,256], index: 1, kind: input, shape index: {}]   ;;  %s3523_s2 = inlined_call_operand.vmem [shape: f32[1,256], index: 2, kind: input, shape index: {}]   ;;  %s3524_s3 = inlined_call_operand.vmem [shape: f32[1,256], index: 3, kind: input, shape index: {}]   ;;  %s3525_s4 = inlined_call_operand.vmem [shape: f32[1,256], index: 4, kind: input, shape index: {}]   ;;  %s3526_s5 = inlined_call_operand.hbm [shape: f32[256,128], index: 5, kind: input, shape index: {}]   ;;  %s3527_s6 = inlined_call_operand.vmem [shape: f32[1,128], index: 6, kind: input, shape index: {}]   ;;  %s3528_s7 = inlined_call_operand.vmem [shape: f32[1,128], index: 7, kind: input, shape index: {}]   ;;  %s3529_s8 = inlined_call_operand.vmem [shape: f32[1,128], index: 8, kind: input, shape index: {}]   ;;  %s3530_s9 = inlined_call_operand.hbm [shape: f32[128,128], index: 9, kind: input, shape index: {}]   ;;  %s3531_s10 = inlined_call_operand.vmem [shape: f32[1,128], index: 10, kind: input, shape index: {}]   ;;  %s3532_s11 = inlined_call_operand.hbm [shape: f32[256,128], index: 11, kind: output, shape index: {}]  }
   0x1   :  { %3539 = sst [smem:[#allocation17_spill]] %s3522_s1 }
   0x2   :  { %3540 = sst [smem:[#allocation18_spill]] %s3529_s8 }
   0x3   :  { %3541 = sst [smem:[#allocation19_spill]] %s3531_s10 }
   0x4   :  { %3542 = sst [smem:[#allocation20_spill]] %s3532_s11 }
   0x5   :  { %16 = vsyncpa [#allocation3], 0 }
   0x6   :  { %18 = vsyncpa [#allocation3 + $0x1], 0 }
   0x7   :  { %19 = vsyncpa [#allocation6], 0 }
   0x8   :  { %20 = vsyncpa [#allocation9], 0 }
   0x9   :  { %21 = vsyncpa [#allocation4], 0 }
   0xa   :  { %23 = vsyncpa [#allocation4 + $0x1], 0  ;;  %s2582_s17 = smov 0   ;;  %s2584_s18 = smov 0  }
   0xb   :  { %s2586_s19 = smov 0   ;;  %s2588_s20 = smov 0  }
   0xc LB: > { %3543 = sst [smem:[#allocation15_spill]] %s2496_s17  ;;  %s2603_s21 = sadd.s32 4294967295, %s2508_s20   ;;  %s2508_s20 = sphi %s2588_s20, %s3571_s20   ;;  %s2504_s19 = sphi %s2586_s19, %s3570_s19   ;;  %s2500_s18 = sphi %s2584_s18, %s3569_s18   ;;  %s2496_s17 = sphi %s2582_s17, %s3568_s17  }
   0xd   : > { %s1866_s22 = sadd.s32 4294967294, %s2508_s20   ;;  %p49_p0 = scmp.ne.s32.totalorder %s2500_s18, %s2496_s17 }
   0xe   : > { %p3533_p1 = scmp.eq.s32.totalorder %s2603_s21, 0  ;;  %p289_p3 = scmp.eq.s32.totalorder %s1866_s22, 1 }
   0xf   : > { %p1867_p5 = scmp.ge.s32.totalorder %s2508_s20, 1  ;;  %p296_p7 = scmp.lt.s32.totalorder %s2508_s20, 3 }
  0x10   : > { %p2612_p4 = por %p3533_p1, %p49_p0  ;;  %p2617_p6 = por %p289_p3, %p49_p0 }
  0x11   : > { %p2622_p8 = pnand %p1867_p5, %p296_p7  ;;  %s2510_s26 = smov [#allocation5]  }
  0x12   : > { %s3544_s23 = scalar_select %p2612_p4, 1, 0 }
  0x13   : > { %s3545_s24 = scalar_select %p2617_p6, 1, 0 }
  0x14   : > { %s3547_s25 = scalar_select %p2622_p8, 1, 0 }
  0x15   : > { %3546 = sst [smem:[#allocation16_spill]] %s3545_s24  ;;  %s308_s27 = sshll.u32 %s2510_s26, 4  ;;  %s2626_s27 = int_to_ptr.vmem [resolvable:$true] %s308_s27 }
  0x16   : > { %p2188_p9 = pneg %p2622_p8  ;;  %s2511_s29 = smov [#allocation7]  }
  0x17   : > { %s330_s30 = sshll.u32 %s2511_s29, 4  ;;  %s3549_s1 = sld [smem:[#allocation17_spill]]  ;;  %s2637_s30 = int_to_ptr.vmem [resolvable:$true] %s330_s30 }
  0x18   : > { %p2633_p11 = pnand %p2188_p9, %p3533_p1 }
  0x1a   : > { %p2647_p13 = pneg %p2633_p11 }
  0x1d   : > { %s2320_s14 = scalar_lea.hbm %s3549_s1, 4096 }
  0x1e   : > { %p2321_p12 = scmp.ne.s32.totalorder %s3549_s1, %s2320_s14  ;;  %p2327_p5 = scmp.lt.u32.totalorder %s2320_s14, %s3549_s1 }
  0x20   : > { %p2323_p0 = pnand %p2647_p13, %p2321_p12 }
  0x22   : > { %p2324_p3 = pneg %p2323_p0 }
  0x24   : > { %p2329_p7 = pnand %p2327_p5, %p2324_p3 }
  0x26   : > { %2332 = shalt.err (!%p2329_p7)
}
  0x27   : > { %s2333_s12 = scalar_lea.vmem %s2626_s27, 4096  ;;  %p2341_p2 = scmp.lt.s32.totalorder %s2626_s27, %s2626_s27 }
  0x28   : > { %p2334_p9 = scmp.ne.s32.totalorder %s2626_s27, %s2333_s12  ;;  %p2342_p6 = scmp.lt.s32.totalorder %s2333_s12, %s2333_s12 }
  0x2a   : > { %p2336_p10 = pnand %p2334_p9, %p2647_p13  ;;  %p2343_p12 = por %p2342_p6, %p2341_p2 }
  0x2c   : > { %p2337_p1 = pneg %p2336_p10 }
  0x2e   : > { %p2344_p0 = pnand %p2343_p12, %p2337_p1 }
  0x30   : > { %2347 = shalt.err (!%p2344_p0)
}
  0x31   : > { %s2512_s13 = smov 256   ;;  %s2513_s14 = smov 16  }
  0x32   : > { %2191 = dma.hbm_to_vmem [thread:$0]  (!%p2633_p11), %s3549_s1, 4096, %s2626_s27, [#allocation6], %s2512_s13, %s2512_s13, %s2513_s14  }
  0x33   : > { %s2348_s24 = scalar_lea.hbm %s3526_s5, 4096 }
  0x34   : > { %p2349_p2 = scmp.ne.s32.totalorder %s3526_s5, %s2348_s24  ;;  %p2355_p10 = scmp.lt.u32.totalorder %s2348_s24, %s3526_s5 }
  0x36   : > { %p2351_p1 = pnand %p2349_p2, %p2647_p13 }
  0x38   : > { %p2352_p6 = pneg %p2351_p1 }
  0x3a   : > { %p2357_p3 = pnand %p2355_p10, %p2352_p6 }
  0x3c   : > { %2360 = shalt.err (!%p2357_p3)
}
  0x3d   : > { %s2361_s27 = scalar_lea.vmem %s2637_s30, 4096  ;;  %p2369_p12 = scmp.lt.s32.totalorder %s2637_s30, %s2637_s30 }
  0x3e   : > { %p2362_p5 = scmp.ne.s32.totalorder %s2637_s30, %s2361_s27  ;;  %p2370_p0 = scmp.lt.s32.totalorder %s2361_s27, %s2361_s27 }
  0x40   : > { %p2364_p7 = pnand %p2362_p5, %p2647_p13  ;;  %p2371_p2 = por %p2370_p0, %p2369_p12 }
  0x42   : > { %p2365_p9 = pneg %p2364_p7 }
  0x44   : > { %p2372_p1 = pnand %p2371_p2, %p2365_p9 }
  0x46   : > { %2375 = shalt.err (!%p2372_p1)
}
  0x47   : > { %s2514_s11 = smov 128   ;;  %s2515_s10 = smov 8  }
  0x48   : > { %2194 = dma.hbm_to_vmem [thread:$0]  (!%p2633_p11), %s3526_s5, 4096, %s2637_s30, [#allocation6], %s2514_s11, %s2514_s11, %s2515_s10  }
  0x49   : > { %s2516_s13 = smov [#allocation8]   ;;  %s2695_s15 = sadd.s32 1, %s2508_s20  }
  0x4a   : > { %s352_s14 = sshll.u32 %s2516_s13, 4  ;;  %s2376_s29 = scalar_lea.hbm %s3530_s9, 2048  ;;  %s353_s14 = int_to_ptr.vmem [resolvable:$true] %s352_s14 }
  0x4b   : > { %p2377_p6 = scmp.ne.s32.totalorder %s3530_s9, %s2376_s29  ;;  %p2383_p5 = scmp.lt.u32.totalorder %s2376_s29, %s3530_s9 }
  0x4d   : > { %p2379_p10 = pnand %p2377_p6, %p2647_p13 }
  0x4f   : > { %p2380_p3 = pneg %p2379_p10 }
  0x51   : > { %p2385_p7 = pnand %p2383_p5, %p2380_p3 }
  0x53   : > { %2388 = shalt.err (!%p2385_p7)
}
  0x54   : > { %s2389_s30 = scalar_lea.vmem %s353_s14, 2048  ;;  %p2397_p2 = scmp.lt.s32.totalorder %s353_s14, %s353_s14 }
  0x55   : > { %p2390_p9 = scmp.ne.s32.totalorder %s353_s14, %s2389_s30  ;;  %p2398_p1 = scmp.lt.s32.totalorder %s2389_s30, %s2389_s30 }
  0x57   : > { %p2392_p12 = pnand %p2390_p9, %p2647_p13  ;;  %p2399_p4 = por %p2398_p1, %p2397_p2 }
  0x59   : > { %p2393_p0 = pneg %p2392_p12 }
  0x5b   : > { %p2400_p8 = pnand %p2399_p4, %p2393_p0 }
  0x5d   : > { %2403 = shalt.err (!%p2400_p8)
}
  0x5e   : > { %2197 = dma.hbm_to_vmem [thread:$0]  (!%p2633_p11), %s3530_s9, 2048, %s353_s14, [#allocation9], %s2514_s11, %s2514_s11, %s2515_s10  }
  0x5f   : > { %s33_s22 = ssub.s32 %s2508_s20, %s2695_s15  ;;  %s36_s28 = sadd.s32 1, %s2504_s19 }
  0x60   : > { %p34_p4 = scmp.eq.s32.totalorder %s33_s22, 0  ;;  %p43_p8 = scmp.ne.s32.totalorder %s2504_s19, %s2500_s18 }
  0x61   : > { %p44_p13 = scmp.eq.s32.totalorder %s2508_s20, 0  ;;  %p2209_p6 = scmp.lt.s32.totalorder %s2508_s20, 2 }
  0x62   : > { %s2726_s17 = scalar_select %p34_p4, %s2504_s19, %s36_s28  }
  0x63   : > { %p45_p10 = por %p44_p13, %p43_p8  ;;  %p3551_p3 = scmp.eq.s32.totalorder %s2603_s21, 1 }
  0x64   : > { %s369_s13 = sand.u32 1, %s2504_s19   ;;  %s1890_s16 = sshll.u32 %s2508_s20, 11 }
  0x65   : > { %p2730_p5 = por %p3551_p3, %p43_p8  ;;  %s1872_s26 = sshll.u32 %s369_s13, 7 }
  0x66   : > { %s2739_s14 = scalar_lea.hbm %s3521_s0, %s1890_s16  ;;  %s373_s27 = scalar_lea.vmem [#allocation2], %s1872_s26 }
  0x67   : > { %s380_s30 = sshll.u32 %s373_s27, 4  ;;  %p2741_p11 = pnand %p2209_p6, %p45_p10  ;;  %s2745_s30 = int_to_ptr.vmem [resolvable:$true] %s380_s30 }
  0x68   : > { %s2747_s8 = scalar_lea.sflag [#allocation3], %s369_s13  ;;  %s2404_s22 = scalar_lea.hbm %s2739_s14, 2048 }
  0x69   : > { %p2405_p7 = scmp.ne.s32.totalorder %s2739_s14, %s2404_s22  ;;  %p2406_p9 = pneg %p2741_p11 }
  0x6a   : > { %s2409_s26 = scalar_lea.hbm %s3521_s0, 4096  ;;  %p2410_p2 = scmp.lt.u32.totalorder %s2739_s14, %s3521_s0 }
  0x6b   : > { %p2407_p12 = pnand %p2406_p9, %p2405_p7  ;;  %p2411_p1 = scmp.lt.u32.totalorder %s2409_s26, %s2404_s22 }
  0x6c   : > { %p2413_p8 = scmp.lt.u32.totalorder %s2404_s22, %s2739_s14 }
  0x6d   : > { %p2408_p0 = pneg %p2407_p12  ;;  %p2412_p4 = por %p2411_p1, %p2410_p2 }
  0x6f   : > { %p2414_p13 = por %p2413_p8, %p2412_p4 }
  0x71   : > { %p2415_p6 = pnand %p2414_p13, %p2408_p0 }
  0x73   : > { %2418 = shalt.err (!%p2415_p6)
}
  0x74   : > { %s2419_s13 = scalar_lea.vmem %s2745_s30, 2048  ;;  %s2517_s27 = smov [#allocation2]  }
  0x75   : > { %p2420_p10 = scmp.ne.s32.totalorder %s2745_s30, %s2419_s13  ;;  %s2424_s28 = sshll.u32 %s2517_s27, 4  ;;  %s2425_s28 = int_to_ptr.vmem [resolvable:$false] %s2424_s28 }
  0x76   : > { %s2426_s16 = scalar_lea.vmem %s2425_s28, 4096  ;;  %p2427_p12 = scmp.lt.s32.totalorder %s2745_s30, %s2425_s28 }
  0x77   : > { %p2422_p3 = pnand %p2420_p10, %p2406_p9  ;;  %p2428_p2 = scmp.lt.s32.totalorder %s2426_s16, %s2419_s13 }
  0x79   : > { %p2423_p7 = pneg %p2422_p3  ;;  %p2429_p1 = por %p2428_p2, %p2427_p12 }
  0x7b   : > { %p2430_p4 = pnand %p2429_p1, %p2423_p7 }
  0x7d   : > { %2433 = shalt.err (!%p2430_p4)
}
  0x7e   : > { %2201 = dma.hbm_to_vmem [thread:$0]  (!%p2741_p11), %s2739_s14, 2048, %s2745_s30, %s2747_s8, %s2514_s11, %s2514_s11, %s2515_s10  }
  0x7f   : > { %p3554_p9 = scmp.ne.s32.totalorder %s3547_s25, 0 }
  0x80   : > { %s2781_s22 = sand.u32 (!%p3554_p9), 1, %s2500_s18   ;;  %p3555_p0 = scmp.ne.s32.totalorder (!%p3554_p9), %s3544_s23, 0 }
  0x81   : > { %392 = sbr.rel (%p3554_p9) target bundleno = 1279 (0x4ff), region = 64  ;;  %s1876_s26 = sshll.u32 (!%p3554_p9), %s2781_s22, 7 }
  0x82   : > { %s395_s29 = scalar_lea.sflag (!%p3554_p9), [#allocation3], %s2781_s22  ;;  %s2787_s1 = scalar_lea.vmem (!%p3554_p9), [#allocation2], %s1876_s26 }
  0x88   : > { %2479 = dma.done.wait (%p3555_p0), %s395_s29, 2048  }
  0x89   : > { %2481 = vsyncadd (%p3555_p0), %s395_s29, 4294965248  ;;  %p3556_p11 = scmp.eq.s32.totalorder %s2603_s21, 0 }
  0x8b   : > { %2483 = dma.done.wait (%p3556_p11), [#allocation6], 8192   ;;  %p3557_p8 = pmov %p3556_p11 }
  0x8d   : > { %2485 = vsyncadd (%p3557_p8), [#allocation6], 4294959104  ;;  %p3558_p13 = pmov %p3557_p8 }
  0x8e   : > { %p3559_p6 = pmov %p3557_p8 }
  0x8f   : > { %2487 = dma.done.wait (%p3558_p13), [#allocation9], 2048  }
  0x90   : > { %2489 = vsyncadd (%p3559_p6), [#allocation9], 4294965248  ;;  %v2518_v0 = vmov 0.0   ;;  %v468_v1 = vld [vmem:[#allocation5 + $0x8] sm:$0xff]  ;;  %v470_v2 = vld [vmem:[#allocation5 + $0x18] sm:$0xff]  ;;  %s3560_s29 = sld [smem:[#allocation18_spill]] }
  0x91   : > { %575 = vmatprep.mubr.f32.mxu0 %v2518_v0  ;;  %v467_v3 = vld [vmem:[#allocation5] sm:$0xff]  ;;  %v2060_v4 = vpack.c.bf16 %v470_v2, %v468_v1  ;;  %v469_v5 = vld [vmem:[#allocation5 + $0x10] sm:$0xff]  ;;  %v472_v6 = vld [vmem:[#allocation5 + $0x28] sm:$0xff]  ;;  %s3561_s25 = sld [smem:[#allocation19_spill]]  ;;  %s3452_s11 = scalar_lea.vmem [#allocation10], %s1876_s26 }
  0x92   : > { %v474_v7 = vld [vmem:[#allocation5 + $0x38] sm:$0xff]  ;;  %v2062_v8 = vpack.c.bf16 %v469_v5, %v467_v3  ;;  %v471_v10 = vld [vmem:[#allocation5 + $0x20] sm:$0xff]  ;;  %v473_v11 = vld [vmem:[#allocation5 + $0x30] sm:$0xff]  ;;  %s1891_s26 = sshll.u32 %s2603_s21, 11  ;;  %s1764_s10 = sshll.u32 %s3452_s11, 4  ;;  %s3475_s10 = int_to_ptr.vmem [resolvable:$true] %s1764_s10 }
  0x93   : > { %v2064_v9 = vpack.c.bf16 %v474_v7, %v472_v6  ;;  %v476_v12 = vld [vmem:[#allocation5 + $0x48] sm:$0xff]  ;;  %2061 = vmatprep.subr.bf16.mxu0 %v2060_v4  ;;  %v478_v13 = vld [vmem:[#allocation5 + $0x58] sm:$0xff]  ;;  %v2066_v14 = vpack.c.bf16 %v473_v11, %v471_v10  ;;  %v475_v16 = vld [vmem:[#allocation5 + $0x40] sm:$0xff]  ;;  %s3562_s8 = sld [smem:[#allocation20_spill]]  ;;  %s1751_s13 = scalar_lea.sflag [#allocation4], %s2781_s22 }
  0x94   : > { %2063 = vmatpush1.bf16.msra.mxu0 %v2062_v8  ;;  %v2068_v15 = vpack.c.bf16 %v478_v13, %v476_v12  ;;  %v477_v17 = vld [vmem:[#allocation5 + $0x50] sm:$0xff]  ;;  %v480_v18 = vld [vmem:[#allocation5 + $0x68] sm:$0xff]  ;;  %v482_v19 = vld [vmem:[#allocation5 + $0x78] sm:$0xff]  ;;  %v501_v8 = vlaneseq  ;;  %s2434_s27 = scalar_lea.vmem %s3475_s10, 2048  ;;  %s2519_s21 = smov [#allocation10]  }
  0x95   : > { %2065 = vmatprep.subr.bf16.mxu0 %v2064_v9  ;;  %v2070_v20 = vpack.c.bf16 %v477_v17, %v475_v16  ;;  %v2072_v21 = vpack.c.bf16 %v482_v19, %v480_v18  ;;  %v479_v22 = vld [vmem:[#allocation5 + $0x60] sm:$0xff]  ;;  %v481_v23 = vld [vmem:[#allocation5 + $0x70] sm:$0xff]  ;;  %v484_v24 = vld [vmem:[#allocation5 + $0x88] sm:$0xff]  ;;  %p2435_p10 = scmp.ne.s32.totalorder %s3475_s10, %s2434_s27  ;;  %s2438_s28 = sshll.u32 %s2519_s21, 4  ;;  %s2439_s28 = int_to_ptr.vmem [resolvable:$false] %s2438_s28 }
  0x96   : > { %v486_v25 = vld [vmem:[#allocation5 + $0x98] sm:$0xff]  ;;  %v2074_v26 = vpack.c.bf16 %v481_v23, %v479_v22  ;;  %v483_v28 = vld [vmem:[#allocation5 + $0x80] sm:$0xff]  ;;  %v485_v29 = vld [vmem:[#allocation5 + $0x90] sm:$0xff]  ;;  %v502_v9 = vshrl.u32 %v501_v8, 7  ;;  %s2440_s16 = scalar_lea.vmem %s2439_s28, 4096  ;;  %p2441_p12 = scmp.lt.s32.totalorder %s3475_s10, %s2439_s28 }
  0x97   : > { %v2076_v27 = vpack.c.bf16 %v486_v25, %v484_v24  ;;  %v488_v30 = vld [vmem:[#allocation5 + $0xa8] sm:$0xff]  ;;  %v490_v31 = vld [vmem:[#allocation5 + $0xb8] sm:$0xff]  ;;  %v2078_v32 = vpack.c.bf16 %v485_v29, %v483_v28  ;;  %v487_v34 = vld [vmem:[#allocation5 + $0xa0] sm:$0xff]  ;;  %p2436_p3 = pnand %p2435_p10, %p2730_p5  ;;  %p2442_p2 = scmp.lt.s32.totalorder %s2440_s16, %s2434_s27 }
  0x98   : > { %2067 = vmatpush1.bf16.msra.mxu0 %v2066_v14  ;;  %v2080_v33 = vpack.c.bf16 %v490_v31, %v488_v30  ;;  %v489_v35 = vld [vmem:[#allocation5 + $0xb0] sm:$0xff]  ;;  %v492_v36 = vld [vmem:[#allocation5 + $0xc8] sm:$0xff]  ;;  %v494_v37 = vld [vmem:[#allocation5 + $0xd8] sm:$0xff]  ;;  %v2833_v10 = vsub.s32 0, %v502_v9  ;;  %v2838_v12 = vsub.s32 1, %v502_v9 }
  0x99   : > { %2069 = vmatprep.subr.bf16.mxu0 %v2068_v15  ;;  %v2082_v38 = vpack.c.bf16 %v489_v35, %v487_v34  ;;  %v2084_v39 = vpack.c.bf16 %v494_v37, %v492_v36  ;;  %v491_v40 = vld [vmem:[#allocation5 + $0xc0] sm:$0xff]  ;;  %v493_v41 = vld [vmem:[#allocation5 + $0xd0] sm:$0xff]  ;;  %v496_v42 = vld [vmem:[#allocation5 + $0xe8] sm:$0xff]  ;;  %s3473_s12 = scalar_lea.hbm %s3562_s8, %s1891_s26  ;;  %p2437_p7 = pneg %p2436_p3 }
  0x9a   : > { %v498_v43 = vld [vmem:[#allocation5 + $0xf8] sm:$0xff]  ;;  %v2086_v44 = vpack.c.bf16 %v493_v41, %v491_v40  ;;  %v495_v46 = vld [vmem:[#allocation5 + $0xe0] sm:$0xff]  ;;  %v497_v47 = vld [vmem:[#allocation5 + $0xf0] sm:$0xff]  ;;  %p2443_p1 = por %p2442_p2, %p2441_p12 }
  0x9b   : > { %v2088_v45 = vpack.c.bf16 %v498_v43, %v496_v42  ;;  %v2090_v48 = vpack.c.bf16 %v497_v47, %v495_v46  ;;  %v451_v49 = vld [vmem:[%s2787_s1] sm:$0xff]  ;;  %v452_v50 = vld [vmem:[%s2787_s1 + $0x8] sm:$0xff]  ;;  %v453_v51 = vld [vmem:[%s2787_s1 + $0x10] sm:$0xff] }
  0x9c   : > { %2071 = vmatpush1.bf16.msra.mxu0 %v2070_v20  ;;  %v454_v52 = vld [vmem:[%s2787_s1 + $0x18] sm:$0xff]  ;;  %v455_v53 = vld [vmem:[%s2787_s1 + $0x20] sm:$0xff]  ;;  %v456_v54 = vld [vmem:[%s2787_s1 + $0x28] sm:$0xff]  ;;  %p2444_p4 = pnand %p2443_p1, %p2437_p7 }
  0x9d   : > { %2073 = vmatprep.subr.bf16.mxu0 %v2072_v21  ;;  %v457_v55 = vld [vmem:[%s2787_s1 + $0x30] sm:$0xff]  ;;  %v458_v56 = vld [vmem:[%s2787_s1 + $0x38] sm:$0xff]  ;;  %v459_v57 = vld [vmem:[%s2787_s1 + $0x40] sm:$0xff] }
  0x9e   : > { %v460_v58 = vld [vmem:[%s2787_s1 + $0x48] sm:$0xff]  ;;  %v461_v59 = vld [vmem:[%s2787_s1 + $0x50] sm:$0xff]  ;;  %v462_v60 = vld [vmem:[%s2787_s1 + $0x58] sm:$0xff] }
  0x9f   : > { %v463_v61 = vld [vmem:[%s2787_s1 + $0x60] sm:$0xff]  ;;  %v464_v62 = vld [vmem:[%s2787_s1 + $0x68] sm:$0xff]  ;;  %v465_v63 = vld [vmem:[%s2787_s1 + $0x70] sm:$0xff] }
  0xa0   : > { %2075 = vmatpush1.bf16.msra.mxu0 %v2074_v26  ;;  %v466_v1 = vld [vmem:[%s2787_s1 + $0x78] sm:$0xff]  ;;  %v1112_v2 = vld [vmem:[#allocation7 + $0x80] sm:$0xff]  ;;  %v1113_v3 = vld [vmem:[#allocation7 + $0x88] sm:$0xff] }
  0xa1   : > { %2077 = vmatprep.subr.bf16.mxu0 %v2076_v27  ;;  %v1096_v4 = vld [vmem:[#allocation7] sm:$0xff]  ;;  %v2092_v5 = vpack.c.bf16 %v1113_v3, %v1112_v2  ;;  %v1097_v6 = vld [vmem:[#allocation7 + $0x8] sm:$0xff]  ;;  %v1115_v2 = vld [vmem:[#allocation7 + $0x98] sm:$0xff] }
  0xa2   : > { %v2094_v7 = vpack.c.bf16 %v1097_v6, %v1096_v4  ;;  %v499_v11 = vld [vmem:[%s3523_s2] sm:$0x3]  ;;  %v1099_v8 = vld [vmem:[#allocation7 + $0x18] sm:$0xff] }
  0xa3   : > { %2093 = vmatprep.subr.bf16.mxu1 %v2092_v5  ;;  %v2844_v13 = vrot.slane %v499_v11, %v2838_v12 }
  0xa4   : > { %2079 = vmatpush1.bf16.msra.mxu0 %v2078_v32  ;;  %2095 = vmatpush3.bf16.msra.mxu1 %v2094_v7  ;;  %v1098_v7 = vld [vmem:[#allocation7 + $0x10] sm:$0xff] }
  0xa5   : > { %2081 = vmatprep.subr.bf16.mxu0 %v2080_v33 }
  0xa8   : > { %2083 = vmatpush1.bf16.msra.mxu0 %v2082_v38 }
  0xa9   : > { %2085 = vmatprep.subr.bf16.mxu0 %v2084_v39 }
  0xac   : > { %2087 = vmatpush1.bf16.msra.mxu0 %v2086_v44 }
  0xad   : > { %2089 = vmatprep.subr.bf16.mxu0 %v2088_v45 }
  0xb0   : > { %2091 = vmatpush1.bf16.msra.mxu0 %v2090_v48 }
  0xb3   : > { %576 = vmatmul.mubr.f32.vlgmr.msra.gmra.mrb[0].mxu0 %v451_v49 }
  0xb4   : > { %581 = vmatprep.mubr.f32.mxu0 %v2518_v0 }
  0xb7   : > { %582 = vmatmul.mubr.f32.gmra.mrb[2].mxu0 %v452_v50 }
  0xb8   : > { %587 = vmatprep.mubr.f32.mxu0 %v2518_v0 }
  0xbb   : > { %588 = vmatmul.mubr.f32.gmra.mrb[4].mxu0 %v453_v51 }
  0xbc   : > { %593 = vmatprep.mubr.f32.mxu0 %v2518_v0 }
  0xbf   : > { %594 = vmatmul.mubr.f32.gmra.mrb[6].mxu0 %v454_v52 }
  0xc0   : > { %599 = vmatprep.mubr.f32.mxu0 %v2518_v0 }
  0xc3   : > { %600 = vmatmul.mubr.f32.gmra.mrb[8].mxu0 %v455_v53 }
  0xc4   : > { %605 = vmatprep.mubr.f32.mxu0 %v2518_v0 }
  0xc7   : > { %606 = vmatmul.mubr.f32.gmra.mrb[10].mxu0 %v456_v54 }
  0xc8   : > { %611 = vmatprep.mubr.f32.mxu0 %v2518_v0 }
  0xcb   : > { %612 = vmatmul.mubr.f32.gmra.mrb[12].mxu0 %v457_v55 }
  0xcc   : > { %617 = vmatprep.mubr.f32.mxu0 %v2518_v0 }
  0xcf   : > { %618 = vmatmul.mubr.f32.gmra.mrb[14].mxu0 %v458_v56 }
  0xd0   : > { %623 = vmatprep.mubr.f32.mxu0 %v2518_v0 }
  0xd3   : > { %624 = vmatmul.mubr.f32.gmra.mrb[16].mxu0 %v459_v57 }
  0xd4   : > { %629 = vmatprep.mubr.f32.mxu0 %v2518_v0 }
  0xd7   : > { %630 = vmatmul.mubr.f32.gmra.mrb[18].mxu0 %v460_v58 }
  0xd8   : > { %635 = vmatprep.mubr.f32.mxu0 %v2518_v0 }
  0xdb   : > { %636 = vmatmul.mubr.f32.gmra.mrb[20].mxu0 %v461_v59 }
  0xdc   : > { %641 = vmatprep.mubr.f32.mxu0 %v2518_v0 }
  0xdf   : > { %642 = vmatmul.mubr.f32.gmra.mrb[22].mxu0 %v462_v60 }
  0xe0   : > { %647 = vmatprep.mubr.f32.mxu0 %v2518_v0 }
  0xe3   : > { %648 = vmatmul.mubr.f32.gmra.mrb[24].mxu0 %v463_v61 }
  0xe4   : > { %653 = vmatprep.mubr.f32.mxu0 %v2518_v0 }
  0xe7   : > { %654 = vmatmul.mubr.f32.gmra.mrb[26].mxu0 %v464_v62 }
  0xe8   : > { %659 = vmatprep.mubr.f32.mxu0 %v2518_v0 }
  0xeb   : > { %660 = vmatmul.mubr.f32.gmra.mrb[28].mxu0 %v465_v63 }
  0xec   : > { %665 = vmatprep.mubr.f32.mxu0 %v2518_v0  ;;  %v2841_v0 = vrot.slane %v499_v11, %v2833_v10  ;;  %v2098_v11 = vpack.c.bf16 %v1099_v8, %v1098_v7 }
  0xef   : > { %666 = vmatmul.mubr.f32.gmra.mrb[30].mxu0 %v466_v1  ;;  %v1114_v1 = vld [vmem:[#allocation7 + $0x90] sm:$0xff] }
  0xf0   : > { %v2096_v6 = vpack.c.bf16 %v1115_v2, %v1114_v1 }
  0xf2   : > { %2097 = vmatprep.subr.bf16.mxu1 %v2096_v6  ;;  %v1105_v6 = vld [vmem:[#allocation7 + $0x48] sm:$0xff] }
  0xf3   : > { %2099 = vmatpush3.bf16.msra.mxu1 %v2098_v11 }
 0x186   : > { %v577_v14 = vpop.f32.mrb[0].mxu0 }
 0x187   : > { %v578_v15 = vadd.f32 %v577_v14, %v2841_v0  ;;  %v579_v16 = vpop.f32.mrb[1].mxu0 }
 0x188   : > { %v580_v17 = vadd.f32 %v579_v16, %v2844_v13 }
 0x189   : > { %v2848_v18 = vmax.f32 %v578_v15, 0.0 }
 0x18a   : > { %v2850_v19 = vmax.f32 %v580_v17, 0.0  ;;  %v583_v20 = vpop.f32.mrb[2].mxu0 }
 0x18b   : > { %v584_v21 = vadd.f32 %v583_v20, %v2841_v0  ;;  %v585_v22 = vpop.f32.mrb[3].mxu0  ;;  %v752_v23 = vmul.f32 %v2848_v18, %v2848_v18 }
 0x18c   : > { %v586_v24 = vadd.f32 %v585_v22, %v2844_v13  ;;  %v704_v25 = vadd.f32 %v2850_v19, %v2848_v18  ;;  %v753_v26 = vmul.f32 %v2850_v19, %v2850_v19  ;;  %v1116_v22 = vld [vmem:[#allocation7 + $0xa0] sm:$0xff] }
 0x18d   : > { %v2860_v27 = vmax.f32 %v584_v21, 0.0 }
 0x18e   : > { %v2862_v28 = vmax.f32 %v586_v24, 0.0  ;;  %v589_v29 = vpop.f32.mrb[4].mxu0  ;;  %705 = vadd.xlane.f32.xlu0 %v704_v25  ;;  %v784_v32 = vadd.f32 %v753_v26, %v752_v23  ;;  %v1117_v23 = vld [vmem:[#allocation7 + $0xa8] sm:$0xff] }
 0x18f   : > { %v590_v30 = vadd.f32 %v589_v29, %v2841_v0  ;;  %v591_v31 = vpop.f32.mrb[5].mxu0  ;;  %v754_v35 = vmul.f32 %v2860_v27, %v2860_v27  ;;  %v2100_v29 = vpack.c.bf16 %v1117_v23, %v1116_v22  ;;  %v1122_v22 = vld [vmem:[#allocation7 + $0xd0] sm:$0xff]  ;;  %v1123_v23 = vld [vmem:[#allocation7 + $0xd8] sm:$0xff] }
 0x190   : > { %v592_v33 = vadd.f32 %v591_v31, %v2844_v13  ;;  %v707_v34 = vadd.f32 %v2862_v28, %v2860_v27  ;;  %v755_v36 = vmul.f32 %v2862_v28, %v2862_v28  ;;  %v1101_v31 = vld [vmem:[#allocation7 + $0x28] sm:$0xff] }
 0x191   : > { %v2872_v37 = vmax.f32 %v590_v30, 0.0  ;;  %v1100_v30 = vld [vmem:[#allocation7 + $0x20] sm:$0xff]  ;;  %2101 = vmatprep.subr.bf16.mxu1 %v2100_v29  ;;  %v2112_v29 = vpack.c.bf16 %v1123_v23, %v1122_v22 }
 0x192   : > { %v2874_v38 = vmax.f32 %v592_v33, 0.0  ;;  %v595_v39 = vpop.f32.mrb[6].mxu0  ;;  %708 = vadd.xlane.f32.xlu1 %v707_v34  ;;  %785 = vadd.xlane.f32.xlu0 %v784_v32  ;;  %v787_v44 = vadd.f32 %v755_v36, %v754_v35  ;;  %v2102_v33 = vpack.c.bf16 %v1101_v31, %v1100_v30  ;;  %v1106_v30 = vld [vmem:[#allocation7 + $0x50] sm:$0xff]  ;;  %v1107_v31 = vld [vmem:[#allocation7 + $0x58] sm:$0xff] }
 0x193   : > { %v596_v40 = vadd.f32 %v595_v39, %v2841_v0  ;;  %v597_v41 = vpop.f32.mrb[7].mxu0  ;;  %v756_v42 = vmul.f32 %v2872_v37, %v2872_v37 }
 0x194   : > { %v598_v43 = vadd.f32 %v597_v41, %v2844_v13  ;;  %v710_v45 = vadd.f32 %v2874_v38, %v2872_v37  ;;  %v757_v46 = vmul.f32 %v2874_v38, %v2874_v38  ;;  %2103 = vmatpush3.bf16.msra.mxu1 %v2102_v33 }
 0x195   : > { %v2884_v47 = vmax.f32 %v596_v40, 0.0 }
 0x196   : > { %v2886_v48 = vmax.f32 %v598_v43, 0.0  ;;  %v601_v49 = vpop.f32.mrb[8].mxu0  ;;  %788 = vadd.xlane.f32.xlu1 %v787_v44  ;;  %711 = vadd.xlane.f32.xlu0 %v710_v45  ;;  %v790_v50 = vadd.f32 %v757_v46, %v756_v42  ;;  %v1118_v42 = vld [vmem:[#allocation7 + $0xb0] sm:$0xff]  ;;  %v1119_v43 = vld [vmem:[#allocation7 + $0xb8] sm:$0xff] }
 0x197   : > { %v602_v51 = vadd.f32 %v601_v49, %v2841_v0  ;;  %v603_v52 = vpop.f32.mrb[9].mxu0  ;;  %v758_v53 = vmul.f32 %v2884_v47, %v2884_v47  ;;  %v2104_v49 = vpack.c.bf16 %v1119_v43, %v1118_v42 }
 0x198   : > { %v604_v54 = vadd.f32 %v603_v52, %v2844_v13  ;;  %v713_v55 = vadd.f32 %v2886_v48, %v2884_v47  ;;  %v759_v56 = vmul.f32 %v2886_v48, %v2886_v48 }
 0x199   : > { %v2896_v57 = vmax.f32 %v602_v51, 0.0  ;;  %v1103_v51 = vld [vmem:[#allocation7 + $0x38] sm:$0xff]  ;;  %2105 = vmatprep.subr.bf16.mxu1 %v2104_v49 }
 0x19a   : > { %v2898_v58 = vmax.f32 %v604_v54, 0.0  ;;  %v607_v59 = vpop.f32.mrb[10].mxu0  ;;  %791 = vadd.xlane.f32.xlu1 %v790_v50  ;;  %714 = vadd.xlane.f32.xlu0 %v713_v55  ;;  %v793_v60 = vadd.f32 %v759_v56, %v758_v53  ;;  %v1102_v50 = vld [vmem:[#allocation7 + $0x30] sm:$0xff] }
 0x19b   : > { %v608_v61 = vadd.f32 %v607_v59, %v2841_v0  ;;  %v609_v62 = vpop.f32.mrb[11].mxu0  ;;  %v760_v63 = vmul.f32 %v2896_v57, %v2896_v57  ;;  %v2106_v53 = vpack.c.bf16 %v1103_v51, %v1102_v50 }
 0x19c   : > { %v610_v3 = vadd.f32 %v609_v62, %v2844_v13  ;;  %v716_v4 = vadd.f32 %v2898_v58, %v2896_v57  ;;  %v761_v5 = vmul.f32 %v2898_v58, %v2898_v58  ;;  %v1120_v62 = vld [vmem:[#allocation7 + $0xc0] sm:$0xff] }
 0x19d   : > { %v2908_v9 = vmax.f32 %v608_v61, 0.0  ;;  %2107 = vmatpush3.bf16.msra.mxu1 %v2106_v53  ;;  %v1108_v53 = vld [vmem:[#allocation7 + $0x60] sm:$0xff] }
 0x19e   : > { %v2910_v14 = vmax.f32 %v610_v3, 0.0  ;;  %v613_v15 = vpop.f32.mrb[12].mxu0  ;;  %794 = vadd.xlane.f32.xlu1 %v793_v60  ;;  %717 = vadd.xlane.f32.xlu0 %v716_v4  ;;  %v796_v16 = vadd.f32 %v761_v5, %v760_v63  ;;  %v1121_v63 = vld [vmem:[#allocation7 + $0xc8] sm:$0xff]  ;;  %v1104_v5 = vld [vmem:[#allocation7 + $0x40] sm:$0xff] }
 0x19f   : > { %v614_v17 = vadd.f32 %v613_v15, %v2841_v0  ;;  %v615_v20 = vpop.f32.mrb[13].mxu0  ;;  %v762_v21 = vmul.f32 %v2908_v9, %v2908_v9  ;;  %v2108_v4 = vpack.c.bf16 %v1121_v63, %v1120_v62  ;;  %v2110_v8 = vpack.c.bf16 %v1105_v6, %v1104_v5 }
 0x1a0   : > { %v616_v24 = vadd.f32 %v615_v20, %v2844_v13  ;;  %v719_v25 = vadd.f32 %v2910_v14, %v2908_v9  ;;  %v763_v26 = vmul.f32 %v2910_v14, %v2910_v14 }
 0x1a1   : > { %v2920_v32 = vmax.f32 %v614_v17, 0.0  ;;  %2109 = vmatprep.subr.bf16.mxu1 %v2108_v4  ;;  %v1127_v4 = vld [vmem:[#allocation7 + $0xf8] sm:$0xff] }
 0x1a2   : > { %v2922_v34 = vmax.f32 %v616_v24, 0.0  ;;  %v619_v35 = vpop.f32.mrb[14].mxu0  ;;  %797 = vadd.xlane.f32.xlu1 %v796_v16  ;;  %720 = vadd.xlane.f32.xlu0 %v719_v25  ;;  %v799_v36 = vadd.f32 %v763_v26, %v762_v21 }
 0x1a3   : > { %v620_v39 = vadd.f32 %v619_v35, %v2841_v0  ;;  %v621_v40 = vpop.f32.mrb[15].mxu0  ;;  %v764_v41 = vmul.f32 %v2920_v32, %v2920_v32  ;;  %2111 = vmatpush3.bf16.msra.mxu1 %v2110_v8  ;;  %v2114_v35 = vpack.c.bf16 %v1107_v31, %v1106_v30 }
 0x1a4   : > { %v622_v44 = vadd.f32 %v621_v40, %v2844_v13  ;;  %v722_v45 = vadd.f32 %v2922_v34, %v2920_v32  ;;  %v765_v46 = vmul.f32 %v2922_v34, %v2922_v34  ;;  %2113 = vmatprep.subr.bf16.mxu1 %v2112_v29 }
 0x1a5   : > { %v2932_v52 = vmax.f32 %v620_v39, 0.0 }
 0x1a6   : > { %v2934_v54 = vmax.f32 %v622_v44, 0.0  ;;  %v625_v55 = vpop.f32.mrb[16].mxu0  ;;  %800 = vadd.xlane.f32.xlu1 %v799_v36  ;;  %723 = vadd.xlane.f32.xlu0 %v722_v45  ;;  %v802_v56 = vadd.f32 %v765_v46, %v764_v41  ;;  %v1124_v44 = vld [vmem:[#allocation7 + $0xe0] sm:$0xff]  ;;  %v1125_v45 = vld [vmem:[#allocation7 + $0xe8] sm:$0xff] }
 0x1a7   : > { %v626_v59 = vadd.f32 %v625_v55, %v2841_v0  ;;  %v627_v60 = vpop.f32.mrb[17].mxu0  ;;  %v766_v61 = vmul.f32 %v2932_v52, %v2932_v52  ;;  %2115 = vmatpush3.bf16.msra.mxu1 %v2114_v35  ;;  %v2116_v51 = vpack.c.bf16 %v1125_v45, %v1124_v44  ;;  %v1109_v55 = vld [vmem:[#allocation7 + $0x68] sm:$0xff] }
 0x1a8   : > { %v628_v1 = vadd.f32 %v627_v60, %v2844_v13  ;;  %v725_v2 = vadd.f32 %v2934_v54, %v2932_v52  ;;  %v767_v3 = vmul.f32 %v2934_v54, %v2934_v54 }
 0x1a9   : > { %v2944_v7 = vmax.f32 %v626_v59, 0.0  ;;  %v2118_v59 = vpack.c.bf16 %v1109_v55, %v1108_v53  ;;  %2117 = vmatprep.subr.bf16.mxu1 %v2116_v51 }
 0x1aa   : > { %v2946_v11 = vmax.f32 %v628_v1, 0.0  ;;  %v631_v15 = vpop.f32.mrb[18].mxu0  ;;  %803 = vadd.xlane.f32.xlu1 %v802_v56  ;;  %726 = vadd.xlane.f32.xlu0 %v725_v2  ;;  %v805_v16 = vadd.f32 %v767_v3, %v766_v61  ;;  %v1126_v3 = vld [vmem:[#allocation7 + $0xf0] sm:$0xff] }
 0x1ab   : > { %v632_v17 = vadd.f32 %v631_v15, %v2841_v0  ;;  %v633_v20 = vpop.f32.mrb[19].mxu0  ;;  %v768_v21 = vmul.f32 %v2944_v7, %v2944_v7  ;;  %2119 = vmatpush3.bf16.msra.mxu1 %v2118_v59  ;;  %v2120_v15 = vpack.c.bf16 %v1127_v4, %v1126_v3 }
 0x1ac   : > { %v634_v24 = vadd.f32 %v633_v20, %v2844_v13  ;;  %v728_v25 = vadd.f32 %v2946_v11, %v2944_v7  ;;  %v769_v26 = vmul.f32 %v2946_v11, %v2946_v11 }
 0x1ad   : > { %v2956_v33 = vmax.f32 %v632_v17, 0.0  ;;  %v1111_v17 = vld [vmem:[#allocation7 + $0x78] sm:$0xff]  ;;  %2121 = vmatprep.subr.bf16.mxu1 %v2120_v15 }
 0x1ae   : > { %v2958_v36 = vmax.f32 %v634_v24, 0.0  ;;  %v637_v39 = vpop.f32.mrb[20].mxu0  ;;  %806 = vadd.xlane.f32.xlu1 %v805_v16  ;;  %729 = vadd.xlane.f32.xlu0 %v728_v25  ;;  %v808_v40 = vadd.f32 %v769_v26, %v768_v21  ;;  %v1110_v16 = vld [vmem:[#allocation7 + $0x70] sm:$0xff] }
 0x1af   : > { %v638_v41 = vadd.f32 %v637_v39, %v2841_v0  ;;  %v639_v42 = vpop.f32.mrb[21].mxu0  ;;  %v770_v43 = vmul.f32 %v2956_v33, %v2956_v33  ;;  %v2122_v21 = vpack.c.bf16 %v1111_v17, %v1110_v16 }
 0x1b0   : > { %v640_v46 = vadd.f32 %v639_v42, %v2844_v13  ;;  %v731_v49 = vadd.f32 %v2958_v36, %v2956_v33  ;;  %v771_v50 = vmul.f32 %v2958_v36, %v2958_v36 }
 0x1b1   : > { %v2968_v56 = vmax.f32 %v638_v41, 0.0  ;;  %2123 = vmatpush3.bf16.msra.mxu1 %v2122_v21 }
 0x1b2   : > { %v2970_v60 = vmax.f32 %v640_v46, 0.0  ;;  %v643_v61 = vpop.f32.mrb[22].mxu0  ;;  %809 = vadd.xlane.f32.xlu1 %v808_v40  ;;  %732 = vadd.xlane.f32.xlu0 %v731_v49  ;;  %v811_v62 = vadd.f32 %v771_v50, %v770_v43 }
 0x1b3   : > { %v644_v63 = vadd.f32 %v643_v61, %v2841_v0  ;;  %v645_v1 = vpop.f32.mrb[23].mxu0  ;;  %v772_v2 = vmul.f32 %v2968_v56, %v2968_v56 }
 0x1b4   : > { %v646_v5 = vadd.f32 %v645_v1, %v2844_v13  ;;  %v734_v6 = vadd.f32 %v2970_v60, %v2968_v56  ;;  %v773_v8 = vmul.f32 %v2970_v60, %v2970_v60 }
 0x1b5   : > { %v2980_v20 = vmax.f32 %v644_v63, 0.0 }
 0x1b6   : > { %v2982_v22 = vmax.f32 %v646_v5, 0.0  ;;  %v649_v23 = vpop.f32.mrb[24].mxu0  ;;  %812 = vadd.xlane.f32.xlu1 %v811_v62  ;;  %735 = vadd.xlane.f32.xlu0 %v734_v6  ;;  %v814_v24 = vadd.f32 %v773_v8, %v772_v2 }
 0x1b7   : > { %v650_v25 = vadd.f32 %v649_v23, %v2841_v0  ;;  %v651_v26 = vpop.f32.mrb[25].mxu0  ;;  %v774_v29 = vmul.f32 %v2980_v20, %v2980_v20 }
 0x1b8   : > { %v652_v30 = vadd.f32 %v651_v26, %v2844_v13  ;;  %v737_v31 = vadd.f32 %v2982_v22, %v2980_v20  ;;  %v775_v35 = vmul.f32 %v2982_v22, %v2982_v22 }
 0x1b9   : > { %v2992_v39 = vmax.f32 %v650_v25, 0.0 }
 0x1ba   : > { %v2994_v40 = vmax.f32 %v652_v30, 0.0  ;;  %v655_v41 = vpop.f32.mrb[26].mxu0  ;;  %815 = vadd.xlane.f32.xlu1 %v814_v24  ;;  %738 = vadd.xlane.f32.xlu0 %v737_v31  ;;  %v817_v42 = vadd.f32 %v775_v35, %v774_v29 }
 0x1bb   : > { %v656_v43 = vadd.f32 %v655_v41, %v2841_v0  ;;  %v657_v44 = vpop.f32.mrb[27].mxu0  ;;  %v776_v45 = vmul.f32 %v2992_v39, %v2992_v39 }
 0x1bc   : > { %v658_v46 = vadd.f32 %v657_v44, %v2844_v13  ;;  %v740_v49 = vadd.f32 %v2994_v40, %v2992_v39  ;;  %v777_v50 = vmul.f32 %v2994_v40, %v2994_v40 }
 0x1bd   : > { %v3004_v51 = vmax.f32 %v656_v43, 0.0 }
 0x1be   : > { %v3006_v53 = vmax.f32 %v658_v46, 0.0  ;;  %v661_v55 = vpop.f32.mrb[28].mxu0  ;;  %818 = vadd.xlane.f32.xlu1 %v817_v42  ;;  %741 = vadd.xlane.f32.xlu0 %v740_v49  ;;  %v820_v59 = vadd.f32 %v777_v50, %v776_v45 }
 0x1bf   : > { %v662_v61 = vadd.f32 %v661_v55, %v2841_v0  ;;  %v663_v62 = vpop.f32.mrb[29].mxu0  ;;  %v778_v63 = vmul.f32 %v3004_v51, %v3004_v51 }
 0x1c0   : > { %v664_v1 = vadd.f32 %v663_v62, %v2844_v13  ;;  %v743_v2 = vadd.f32 %v3006_v53, %v3004_v51  ;;  %v779_v3 = vmul.f32 %v3006_v53, %v3006_v53 }
 0x1c1   : > { %v3016_v4 = vmax.f32 %v662_v61, 0.0 }
 0x1c2   : > { %v3018_v5 = vmax.f32 %v664_v1, 0.0  ;;  %v667_v6 = vpop.f32.mrb[30].mxu0  ;;  %821 = vadd.xlane.f32.xlu1 %v820_v59  ;;  %744 = vadd.xlane.f32.xlu0 %v743_v2  ;;  %v823_v8 = vadd.f32 %v779_v3, %v778_v63 }
 0x1c3   : > { %v668_v15 = vadd.f32 %v667_v6, %v2841_v0  ;;  %v669_v16 = vpop.f32.mrb[31].mxu0  ;;  %v780_v17 = vmul.f32 %v3016_v4, %v3016_v4 }
 0x1c4   : > { %v670_v21 = vadd.f32 %v669_v16, %v2844_v13  ;;  %v746_v23 = vadd.f32 %v3018_v5, %v3016_v4  ;;  %v781_v24 = vmul.f32 %v3018_v5, %v3018_v5 }
 0x1c5   : > { %v3028_v25 = vmax.f32 %v668_v15, 0.0 }
 0x1c6   : > { %v3030_v26 = vmax.f32 %v670_v21, 0.0  ;;  %824 = vadd.xlane.f32.xlu1 %v823_v8  ;;  %747 = vadd.xlane.f32.xlu0 %v746_v23  ;;  %v826_v29 = vadd.f32 %v781_v24, %v780_v17 }
 0x1c7   : > { %v782_v0 = vmul.f32 %v3028_v25, %v3028_v25 }
 0x1c8   : > { %v749_v30 = vadd.f32 %v3030_v26, %v3028_v25  ;;  %v783_v13 = vmul.f32 %v3030_v26, %v3030_v26 }
 0x1ca   : > { %827 = vadd.xlane.f32.xlu1 %v826_v29  ;;  %750 = vadd.xlane.f32.xlu0 %v749_v30  ;;  %v829_v31 = vadd.f32 %v783_v13, %v782_v0 }
 0x1ce   : > { %830 = vadd.xlane.f32.xlu1 %v829_v31 }
 0x21b   : > { %v706_v35 = vpop.xlane.xlu0 %705 }
 0x21c   : > { %v832_v41 = vmul.f32 0.00390625, %v706_v35 }
 0x21e   : > { %v864_v45 = vmul.f32 %v832_v41, %v832_v41 }
 0x21f   : > { %v709_v42 = vpop.xlane.xlu1 %708  ;;  %v786_v43 = vpop.xlane.xlu0 %785 }
 0x220   : > { %v3038_v44 = vmul.f32 0.00390625, %v709_v42  ;;  %v848_v46 = vmul.f32 0.00390625, %v786_v43  ;;  %v1008_v43 = vld [vmem:[%s3524_s3] sm:$0x3] }
 0x222   : > { %v880_v49 = vsub.f32 %v848_v46, %v864_v45  ;;  %v865_v61 = vmul.f32 %v3038_v44, %v3038_v44 }
 0x223   : > { %v789_v50 = vpop.xlane.xlu1 %788  ;;  %v712_v55 = vpop.xlane.xlu0 %711 }
 0x224   : > { %v896_v59 = vmax.f32 %v880_v49, 0.0  ;;  %v849_v62 = vmul.f32 0.00390625, %v789_v50  ;;  %v3042_v63 = vmul.f32 0.00390625, %v712_v55  ;;  %v1052_v50 = vld [vmem:[%s3525_s4] sm:$0x3] }
 0x226   : > { %v944_v1 = vadd.f32 1e-05, %v896_v59  ;;  %v881_v2 = vsub.f32 %v849_v62, %v865_v61  ;;  %v866_v6 = vmul.f32 %v3042_v63, %v3042_v63  ;;  %v912_v62 = vsub.f32 %v2848_v18, %v832_v41 }
 0x227   : > { %v792_v3 = vpop.xlane.xlu1 %791  ;;  %v715_v8 = vpop.xlane.xlu0 %714 }
 0x228   : > { %2256 = vrsqrt.f32 %v944_v1  ;;  %v897_v15 = vmax.f32 %v881_v2, 0.0  ;;  %v850_v16 = vmul.f32 0.00390625, %v792_v3  ;;  %v3046_v17 = vmul.f32 0.00390625, %v715_v8 }
 0x229   : > { %v913_v1 = vsub.f32 %v2850_v19, %v832_v41  ;;  %v3065_v2 = vrot.slane %v1008_v43, %v2833_v10  ;;  %v3068_v3 = vrot.slane %v1008_v43, %v2838_v12  ;;  %v3076_v19 = vrot.slane %v1052_v50, %v2838_v12 }
 0x22a   : > { %v945_v21 = vadd.f32 1e-05, %v897_v15  ;;  %v882_v23 = vsub.f32 %v850_v16, %v866_v6  ;;  %v867_v29 = vmul.f32 %v3046_v17, %v3046_v17  ;;  %v3071_v16 = vrot.slane %v1052_v50, %v2833_v10 }
 0x22b   : > { %v795_v24 = vpop.xlane.xlu1 %794  ;;  %v718_v0 = vpop.xlane.xlu0 %717  ;;  %v914_v43 = vsub.f32 %v2860_v27, %v3038_v44  ;;  %v917_v27 = vsub.f32 %v2874_v38, %v3042_v63 }
 0x22c   : > { %2258 = vrsqrt.f32 %v945_v21  ;;  %v898_v30 = vmax.f32 %v882_v23, 0.0  ;;  %v851_v13 = vmul.f32 0.00390625, %v795_v24  ;;  %v3050_v31 = vmul.f32 0.00390625, %v718_v0 }
 0x22e   : > { %v946_v35 = vadd.f32 1e-05, %v898_v30  ;;  %v883_v42 = vsub.f32 %v851_v13, %v867_v29  ;;  %v868_v46 = vmul.f32 %v3050_v31, %v3050_v31  ;;  %v915_v13 = vsub.f32 %v2862_v28, %v3038_v44 }
 0x22f   : > { %v798_v45 = vpop.xlane.xlu1 %797  ;;  %v721_v49 = vpop.xlane.xlu0 %720 }
 0x230   : > { %2260 = vrsqrt.f32 %v946_v35  ;;  %v899_v55 = vmax.f32 %v883_v42, 0.0  ;;  %v852_v59 = vmul.f32 0.00390625, %v798_v45  ;;  %v3060_v61 = vmul.f32 0.00390625, %v721_v49 }
 0x232   : > { %v2257_v6 = vpop.eup %2256  ;;  %v947_v8 = vadd.f32 1e-05, %v899_v55  ;;  %v884_v15 = vsub.f32 %v852_v59, %v868_v46  ;;  %v869_v23 = vmul.f32 %v3060_v61, %v3060_v61 }
 0x233   : > { %v801_v21 = vpop.xlane.xlu1 %800  ;;  %v724_v24 = vpop.xlane.xlu0 %723  ;;  %v977_v18 = vmul.f32 %v2257_v6, %v913_v1  ;;  %v976_v41 = vmul.f32 %v2257_v6, %v912_v62 }
 0x234   : > { %2262 = vrsqrt.f32 %v947_v8  ;;  %v900_v29 = vmax.f32 %v884_v15, 0.0  ;;  %v853_v0 = vmul.f32 0.00390625, %v801_v21  ;;  %v3078_v30 = vmul.f32 0.00390625, %v724_v24 }
 0x235   : > { %v1021_v10 = vmul.f32 %v3068_v3, %v977_v18  ;;  %v1020_v35 = vmul.f32 %v3065_v2, %v976_v41  ;;  %v916_v21 = vsub.f32 %v2872_v37, %v3042_v63  ;;  %v919_v37 = vsub.f32 %v2886_v48, %v3046_v17 }
 0x236   : > { %v2259_v42 = vpop.eup %2258  ;;  %v948_v45 = vadd.f32 1e-05, %v900_v29  ;;  %v885_v12 = vsub.f32 %v853_v0, %v869_v23  ;;  %v870_v49 = vmul.f32 %v3078_v30, %v3078_v30 }
 0x237   : > { %v804_v46 = vpop.xlane.xlu1 %803  ;;  %v727_v50 = vpop.xlane.xlu0 %726  ;;  %v1065_v55 = vadd.f32 %v3076_v19, %v1021_v10  ;;  %v1064_v59 = vadd.f32 %v3071_v16, %v1020_v35  ;;  %v979_v28 = vmul.f32 %v2259_v42, %v915_v13  ;;  %v978_v8 = vmul.f32 %v2259_v42, %v914_v43 }
 0x238   : > { %2264 = vrsqrt.f32 %v948_v45  ;;  %v901_v62 = vmax.f32 %v885_v12, 0.0  ;;  %v854_v1 = vmul.f32 0.00390625, %v804_v46  ;;  %v3090_v6 = vmul.f32 0.00390625, %v727_v50 }
 0x239   : > { %1199 = vmatprep.mubr.f32.mxu1 %v1065_v55  ;;  %v1023_v44 = vmul.f32 %v3068_v3, %v979_v28  ;;  %v1022_v38 = vmul.f32 %v3065_v2, %v978_v8  ;;  %v918_v46 = vsub.f32 %v2884_v47, %v3046_v17 }
 0x23a   : > { %v2261_v15 = vpop.eup %2260  ;;  %v949_v23 = vadd.f32 1e-05, %v901_v62  ;;  %v886_v24 = vsub.f32 %v854_v1, %v870_v49  ;;  %1200 = vmatmul.mubr.f32.vlgmr.msra.gmra.mrb[0].mxu1 %v1064_v59  ;;  %v871_v41 = vmul.f32 %v3090_v6, %v3090_v6 }
 0x23b   : > { %v807_v18 = vpop.xlane.xlu1 %806  ;;  %v730_v29 = vpop.xlane.xlu0 %729  ;;  %v1067_v0 = vadd.f32 %v3076_v19, %v1023_v44  ;;  %v981_v13 = vmul.f32 %v2261_v15, %v917_v27  ;;  %v1066_v63 = vadd.f32 %v3071_v16, %v1022_v38  ;;  %v980_v45 = vmul.f32 %v2261_v15, %v916_v21 }
 0x23c   : > { %2266 = vrsqrt.f32 %v949_v23  ;;  %v902_v10 = vmax.f32 %v886_v24, 0.0  ;;  %v855_v35 = vmul.f32 0.00390625, %v807_v18  ;;  %v3101_v42 = vmul.f32 0.00390625, %v730_v29 }
 0x23d   : > { %1204 = vmatprep.mubr.f32.mxu1 %v1067_v0  ;;  %v1025_v43 = vmul.f32 %v3068_v3, %v981_v13  ;;  %v1024_v62 = vmul.f32 %v3065_v2, %v980_v45  ;;  %v921_v27 = vsub.f32 %v2898_v58, %v3050_v31  ;;  %v920_v24 = vsub.f32 %v2896_v57, %v3050_v31 }
 0x23e   : > { %v2263_v12 = vpop.eup %2262  ;;  %v950_v49 = vadd.f32 1e-05, %v902_v10  ;;  %v887_v50 = vsub.f32 %v855_v35, %v871_v41  ;;  %1205 = vmatmul.mubr.f32.gmra.mrb[2].mxu1 %v1066_v63  ;;  %v872_v59 = vmul.f32 %v3101_v42, %v3101_v42  ;;  %v923_v35 = vsub.f32 %v2910_v14, %v3060_v61 }
 0x23f   : > { %v810_v55 = vpop.xlane.xlu1 %809  ;;  %v733_v28 = vpop.xlane.xlu0 %732  ;;  %v1069_v48 = vadd.f32 %v3076_v19, %v1025_v43  ;;  %v983_v1 = vmul.f32 %v2263_v12, %v919_v37  ;;  %v1068_v17 = vadd.f32 %v3071_v16, %v1024_v62  ;;  %v982_v21 = vmul.f32 %v2263_v12, %v918_v46 }
 0x240   : > { %2268 = vrsqrt.f32 %v950_v49  ;;  %v903_v44 = vmax.f32 %v887_v50, 0.0  ;;  %v856_v8 = vmul.f32 0.00390625, %v810_v55  ;;  %v3115_v47 = vmul.f32 0.00390625, %v733_v28 }
 0x241   : > { %1209 = vmatprep.mubr.f32.mxu1 %v1069_v48  ;;  %v1027_v15 = vmul.f32 %v3068_v3, %v983_v1  ;;  %v1026_v13 = vmul.f32 %v3065_v2, %v982_v21  ;;  %v922_v46 = vsub.f32 %v2908_v9, %v3060_v61  ;;  %v925_v1 = vsub.f32 %v2922_v34, %v3078_v30 }
 0x242   : > { %v2265_v23 = vpop.eup %2264  ;;  %v951_v18 = vadd.f32 1e-05, %v903_v44  ;;  %v888_v41 = vsub.f32 %v856_v8, %v872_v59  ;;  %1210 = vmatmul.mubr.f32.gmra.mrb[4].mxu1 %v1068_v17  ;;  %v873_v58 = vmul.f32 %v3115_v47, %v3115_v47  ;;  %v924_v21 = vsub.f32 %v2920_v32, %v3078_v30 }
 0x243   : > { %v813_v29 = vpop.xlane.xlu1 %812  ;;  %v736_v0 = vpop.xlane.xlu0 %735  ;;  %v1071_v38 = vadd.f32 %v3076_v19, %v1027_v15  ;;  %v985_v10 = vmul.f32 %v2265_v23, %v921_v27  ;;  %v1070_v31 = vadd.f32 %v3071_v16, %v1026_v13  ;;  %v984_v45 = vmul.f32 %v2265_v23, %v920_v24 }
 0x244   : > { %2270 = vrsqrt.f32 %v951_v18  ;;  %v904_v37 = vmax.f32 %v888_v41, 0.0  ;;  %v857_v63 = vmul.f32 0.00390625, %v813_v29  ;;  %v3127_v57 = vmul.f32 0.00390625, %v736_v0 }
 0x245   : > { %1214 = vmatprep.mubr.f32.mxu1 %v1071_v38  ;;  %v1029_v43 = vmul.f32 %v3068_v3, %v985_v10  ;;  %v1028_v48 = vmul.f32 %v3065_v2, %v984_v45  ;;  %v927_v38 = vsub.f32 %v2934_v54, %v3090_v6 }
 0x246   : > { %v2267_v12 = vpop.eup %2266  ;;  %v952_v49 = vadd.f32 1e-05, %v904_v37  ;;  %v889_v50 = vsub.f32 %v857_v63, %v873_v58  ;;  %1215 = vmatmul.mubr.f32.gmra.mrb[6].mxu1 %v1070_v31  ;;  %v874_v14 = vmul.f32 %v3127_v57, %v3127_v57  ;;  %v926_v31 = vsub.f32 %v2932_v52, %v3090_v6 }
 0x247   : > { %v816_v55 = vpop.xlane.xlu1 %815  ;;  %v739_v59 = vpop.xlane.xlu0 %738  ;;  %v1073_v28 = vadd.f32 %v3076_v19, %v1029_v43  ;;  %v987_v62 = vmul.f32 %v2267_v12, %v923_v35  ;;  %v1072_v61 = vadd.f32 %v3071_v16, %v1028_v48  ;;  %v986_v17 = vmul.f32 %v2267_v12, %v922_v46 }
 0x248   : > { %2272 = vrsqrt.f32 %v952_v49  ;;  %v905_v27 = vmax.f32 %v889_v50, 0.0  ;;  %v858_v44 = vmul.f32 0.00390625, %v816_v55  ;;  %v3139_v9 = vmul.f32 0.00390625, %v739_v59 }
 0x249   : > { %1219 = vmatprep.mubr.f32.mxu1 %v1073_v28  ;;  %v1031_v8 = vmul.f32 %v3068_v3, %v987_v62  ;;  %v1030_v58 = vmul.f32 %v3065_v2, %v986_v17 }
 0x24a   : > { %v2269_v15 = vpop.eup %2268  ;;  %v953_v23 = vadd.f32 1e-05, %v905_v27  ;;  %v890_v24 = vsub.f32 %v858_v44, %v874_v14  ;;  %1220 = vmatmul.mubr.f32.gmra.mrb[8].mxu1 %v1072_v61  ;;  %v875_v34 = vmul.f32 %v3139_v9, %v3139_v9  ;;  %v929_v14 = vsub.f32 %v2946_v11, %v3101_v42 }
 0x24b   : > { %v819_v18 = vpop.xlane.xlu1 %818  ;;  %v742_v41 = vpop.xlane.xlu0 %741  ;;  %v1075_v29 = vadd.f32 %v3076_v19, %v1031_v8  ;;  %v989_v0 = vmul.f32 %v2269_v15, %v925_v1  ;;  %v1074_v30 = vadd.f32 %v3071_v16, %v1030_v58  ;;  %v988_v37 = vmul.f32 %v2269_v15, %v924_v21 }
 0x24c   : > { %2274 = vrsqrt.f32 %v953_v23  ;;  %v906_v13 = vmax.f32 %v890_v24, 0.0  ;;  %v859_v10 = vmul.f32 0.00390625, %v819_v18  ;;  %v3151_v32 = vmul.f32 0.00390625, %v742_v41 }
 0x24d   : > { %1224 = vmatprep.mubr.f32.mxu1 %v1075_v29  ;;  %v1033_v35 = vmul.f32 %v3068_v3, %v989_v0  ;;  %v1032_v50 = vmul.f32 %v3065_v2, %v988_v37  ;;  %v928_v27 = vsub.f32 %v2944_v7, %v3101_v42  ;;  %v931_v24 = vsub.f32 %v2958_v36, %v3115_v47 }
 0x24e   : > { %v2271_v63 = vpop.eup %2270  ;;  %v954_v43 = vadd.f32 1e-05, %v906_v13  ;;  %v891_v45 = vsub.f32 %v859_v10, %v875_v34  ;;  %1225 = vmatmul.mubr.f32.gmra.mrb[10].mxu1 %v1074_v30  ;;  %v876_v54 = vmul.f32 %v3151_v32, %v3151_v32  ;;  %v930_v0 = vsub.f32 %v2956_v33, %v3115_v47 }
 0x24f   : > { %v822_v12 = vpop.xlane.xlu1 %821  ;;  %v745_v46 = vpop.xlane.xlu0 %744  ;;  %v1077_v49 = vadd.f32 %v3076_v19, %v1033_v35  ;;  %v991_v55 = vmul.f32 %v2271_v63, %v927_v38  ;;  %v1076_v6 = vadd.f32 %v3071_v16, %v1032_v50  ;;  %v990_v62 = vmul.f32 %v2271_v63, %v926_v31 }
 0x250   : > { %2276 = vrsqrt.f32 %v954_v43  ;;  %v907_v59 = vmax.f32 %v891_v45, 0.0  ;;  %v860_v28 = vmul.f32 0.00390625, %v822_v12  ;;  %v3163_v52 = vmul.f32 0.00390625, %v745_v46 }
 0x251   : > { %1229 = vmatprep.mubr.f32.mxu1 %v1077_v49  ;;  %v1035_v48 = vmul.f32 %v3068_v3, %v991_v55  ;;  %v1034_v21 = vmul.f32 %v3065_v2, %v990_v62  ;;  %v933_v31 = vsub.f32 %v2970_v60, %v3127_v57  ;;  %v932_v49 = vsub.f32 %v2968_v56, %v3127_v57 }
 0x252   : > { %v2273_v1 = vpop.eup %2272  ;;  %v955_v44 = vadd.f32 1e-05, %v907_v59  ;;  %v892_v61 = vsub.f32 %v860_v28, %v876_v54  ;;  %1230 = vmatmul.mubr.f32.gmra.mrb[12].mxu1 %v1076_v6  ;;  %v877_v11 = vmul.f32 %v3163_v52, %v3163_v52  ;;  %v935_v56 = vsub.f32 %v2982_v22, %v3139_v9 }
 0x253   : > { %v825_v8 = vpop.xlane.xlu1 %824  ;;  %v748_v17 = vpop.xlane.xlu0 %747  ;;  %v1079_v15 = vadd.f32 %v3076_v19, %v1035_v48  ;;  %v993_v23 = vmul.f32 %v2273_v1, %v929_v14  ;;  %v1078_v42 = vadd.f32 %v3071_v16, %v1034_v21  ;;  %v992_v29 = vmul.f32 %v2273_v1, %v928_v27 }
 0x254   : > { %2278 = vrsqrt.f32 %v955_v44  ;;  %v908_v18 = vmax.f32 %v892_v61, 0.0  ;;  %v861_v34 = vmul.f32 0.00390625, %v825_v8  ;;  %v3175_v7 = vmul.f32 0.00390625, %v748_v17 }
 0x255   : > { %1234 = vmatprep.mubr.f32.mxu1 %v1079_v15  ;;  %v1037_v41 = vmul.f32 %v3068_v3, %v993_v23  ;;  %v1036_v37 = vmul.f32 %v3065_v2, %v992_v29  ;;  %v934_v27 = vsub.f32 %v2980_v20, %v3139_v9  ;;  %v936_v22 = vsub.f32 %v2992_v39, %v3151_v32 }
 0x256   : > { %v2275_v58 = vpop.eup %2274  ;;  %v956_v38 = vadd.f32 1e-05, %v908_v18  ;;  %v893_v13 = vsub.f32 %v861_v34, %v877_v11  ;;  %1235 = vmatmul.mubr.f32.gmra.mrb[14].mxu1 %v1078_v42  ;;  %v878_v36 = vmul.f32 %v3175_v7, %v3175_v7  ;;  %v937_v9 = vsub.f32 %v2994_v40, %v3151_v32 }
 0x257   : > { %v828_v10 = vpop.xlane.xlu1 %827  ;;  %v751_v30 = vpop.xlane.xlu0 %750  ;;  %v1081_v35 = vadd.f32 %v3076_v19, %v1037_v41  ;;  %v995_v63 = vmul.f32 %v2275_v58, %v931_v24  ;;  %v1080_v47 = vadd.f32 %v3071_v16, %v1036_v37  ;;  %v994_v54 = vmul.f32 %v2275_v58, %v930_v0 }
 0x258   : > { %2280 = vrsqrt.f32 %v956_v38  ;;  %v909_v43 = vmax.f32 %v893_v13, 0.0  ;;  %v862_v45 = vmul.f32 0.00390625, %v828_v10  ;;  %v3187_v33 = vmul.f32 0.00390625, %v751_v30 }
 0x259   : > { %1239 = vmatprep.mubr.f32.mxu1 %v1081_v35  ;;  %v1039_v12 = vmul.f32 %v3068_v3, %v995_v63  ;;  %v1038_v28 = vmul.f32 %v3065_v2, %v994_v54  ;;  %v938_v39 = vsub.f32 %v3004_v51, %v3163_v52  ;;  %v939_v40 = vsub.f32 %v3006_v53, %v3163_v52 }
 0x25a   : > { %v2277_v46 = vpop.eup %2276  ;;  %v957_v50 = vadd.f32 1e-05, %v909_v43  ;;  %v894_v55 = vsub.f32 %v862_v45, %v878_v36  ;;  %1240 = vmatmul.mubr.f32.gmra.mrb[16].mxu1 %v1080_v47  ;;  %v879_v60 = vmul.f32 %v3187_v33, %v3187_v33  ;;  %v940_v63 = vsub.f32 %v3016_v4, %v3175_v7 }
 0x25b   : > { %v831_v14 = vpop.xlane.xlu1 %830  ;;  %v1083_v59 = vadd.f32 %v3076_v19, %v1039_v12  ;;  %v997_v6 = vmul.f32 %v2277_v46, %v933_v31  ;;  %v996_v1 = vmul.f32 %v2277_v46, %v932_v49  ;;  %v1082_v57 = vadd.f32 %v3071_v16, %v1038_v28  ;;  %v3245_v28 = vld [vmem:[%s3527_s6] ss:$0 sm:$0xff] }
 0x25c   : > { %2282 = vrsqrt.f32 %v957_v50  ;;  %v910_v48 = vmax.f32 %v894_v55, 0.0  ;;  %v863_v62 = vmul.f32 0.00390625, %v831_v14  ;;  %v941_v51 = vsub.f32 %v3018_v5, %v3175_v7 }
 0x25d   : > { %1244 = vmatprep.mubr.f32.mxu1 %v1083_v59  ;;  %v1041_v44 = vmul.f32 %v3068_v3, %v997_v6  ;;  %v1040_v17 = vmul.f32 %v3065_v2, %v996_v1  ;;  %v942_v54 = vsub.f32 %v3028_v25, %v3187_v33  ;;  %v943_v4 = vsub.f32 %v3030_v26, %v3187_v33 }
 0x25e   : > { %v2279_v61 = vpop.eup %2278  ;;  %v958_v8 = vadd.f32 1e-05, %v910_v48  ;;  %v895_v11 = vsub.f32 %v863_v62, %v879_v60  ;;  %1245 = vmatmul.mubr.f32.gmra.mrb[18].mxu1 %v1082_v57 }
 0x25f   : > { %v1085_v15 = vadd.f32 %v3076_v19, %v1041_v44  ;;  %v999_v21 = vmul.f32 %v2279_v61, %v935_v56  ;;  %v998_v23 = vmul.f32 %v2279_v61, %v934_v27  ;;  %v1084_v24 = vadd.f32 %v3071_v16, %v1040_v17 }
 0x260   : > { %2284 = vrsqrt.f32 %v958_v8  ;;  %v911_v20 = vmax.f32 %v895_v11, 0.0 }
 0x261   : > { %1249 = vmatprep.mubr.f32.mxu1 %v1085_v15  ;;  %v1043_v18 = vmul.f32 %v3068_v3, %v999_v21  ;;  %v1042_v34 = vmul.f32 %v3065_v2, %v998_v23 }
 0x262   : > { %v2281_v42 = vpop.eup %2280  ;;  %v959_v41 = vadd.f32 1e-05, %v911_v20  ;;  %1250 = vmatmul.mubr.f32.gmra.mrb[20].mxu1 %v1084_v24 }
 0x263   : > { %v1087_v29 = vadd.f32 %v3076_v19, %v1043_v18  ;;  %v1086_v58 = vadd.f32 %v3071_v16, %v1042_v34  ;;  %v1001_v0 = vmul.f32 %v2281_v42, %v937_v9  ;;  %v1000_v38 = vmul.f32 %v2281_v42, %v936_v22 }
 0x264   : > { %2286 = vrsqrt.f32 %v959_v41 }
 0x265   : > { %1254 = vmatprep.mubr.f32.mxu1 %v1087_v29  ;;  %v1045_v32 = vmul.f32 %v3068_v3, %v1001_v0  ;;  %v1044_v13 = vmul.f32 %v3065_v2, %v1000_v38  ;;  %v1566_v0 = vld [vmem:[#allocation8] sm:$0xff]  ;;  %v1567_v38 = vld [vmem:[#allocation8 + $0x8] sm:$0xff] }
 0x266   : > { %v2283_v10 = vpop.eup %2282  ;;  %1255 = vmatmul.mubr.f32.gmra.mrb[22].mxu1 %v1086_v58 }
 0x267   : > { %v1089_v36 = vadd.f32 %v3076_v19, %v1045_v32  ;;  %v1088_v30 = vadd.f32 %v3071_v16, %v1044_v13  ;;  %v1003_v35 = vmul.f32 %v2283_v10, %v939_v40  ;;  %v1002_v37 = vmul.f32 %v2283_v10, %v938_v39 }
 0x268   : > { %v2124_v40 = vpack.c.bf16 %v1567_v38, %v1566_v0  ;;  %v1580_v0 = vld [vmem:[#allocation8 + $0x70] sm:$0xff]  ;;  %v1581_v38 = vld [vmem:[#allocation8 + $0x78] sm:$0xff] }
 0x269   : > { %1259 = vmatprep.mubr.f32.mxu1 %v1089_v36  ;;  %v1047_v53 = vmul.f32 %v3068_v3, %v1003_v35  ;;  %v1046_v52 = vmul.f32 %v3065_v2, %v1002_v37  ;;  %v1568_v36 = vld [vmem:[#allocation8 + $0x10] sm:$0xff] }
 0x26a   : > { %v2285_v31 = vpop.eup %2284  ;;  %1260 = vmatmul.mubr.f32.gmra.mrb[24].mxu1 %v1088_v30  ;;  %2125 = vmatprep.subr.bf16.mxu0 %v2124_v40  ;;  %v1569_v30 = vld [vmem:[#allocation8 + $0x18] sm:$0xff] }
 0x26b   : > { %v1091_v43 = vadd.f32 %v3076_v19, %v1047_v53  ;;  %v1090_v45 = vadd.f32 %v3071_v16, %v1046_v52  ;;  %v1005_v47 = vmul.f32 %v2285_v31, %v941_v51  ;;  %v1004_v12 = vmul.f32 %v2285_v31, %v940_v63  ;;  %2156 = vmatprep.subr.bf16.mxu1 %v2124_v40  ;;  %v1570_v31 = vld [vmem:[#allocation8 + $0x20] sm:$0xff] }
 0x26c   : > { %2127 = vmatpush3.bf16.msra.mxu0 %v2124_v40  ;;  %2164 = vmatpush3.bf16.msra.mxu1 %v2124_v40  ;;  %v2128_v37 = vpack.c.bf16 %v1569_v30, %v1568_v36 }
 0x26d   : > { %1264 = vmatprep.mubr.f32.mxu1 %v1091_v43  ;;  %v1049_v5 = vmul.f32 %v3068_v3, %v1005_v47  ;;  %v1048_v7 = vmul.f32 %v3065_v2, %v1004_v12  ;;  %v1571_v43 = vld [vmem:[#allocation8 + $0x28] sm:$0xff] }
 0x26e   : > { %v2287_v46 = vpop.eup %2286  ;;  %1265 = vmatmul.mubr.f32.gmra.mrb[26].mxu1 %v1090_v45  ;;  %2129 = vmatprep.subr.bf16.mxu0 %v2128_v37  ;;  %v2132_v47 = vpack.c.bf16 %v1571_v43, %v1570_v31 }
 0x26f   : > { %v1093_v49 = vadd.f32 %v3076_v19, %v1049_v5  ;;  %v1092_v50 = vadd.f32 %v3071_v16, %v1048_v7  ;;  %v1007_v55 = vmul.f32 %v2287_v46, %v943_v4  ;;  %v1006_v14 = vmul.f32 %v2287_v46, %v942_v54  ;;  %2157 = vmatprep.subr.bf16.mxu1 %v2128_v37  ;;  %v1572_v7 = vld [vmem:[#allocation8 + $0x30] sm:$0xff]  ;;  %v1573_v46 = vld [vmem:[#allocation8 + $0x38] sm:$0xff] }
 0x270   : > { %2131 = vmatpush3.bf16.msra.mxu0 %v2128_v37  ;;  %2165 = vmatpush3.bf16.msra.mxu1 %v2128_v37 }
 0x271   : > { %1269 = vmatprep.mubr.f32.mxu1 %v1093_v49  ;;  %v1051_v60 = vmul.f32 %v3068_v3, %v1007_v55  ;;  %v1050_v25 = vmul.f32 %v3065_v2, %v1006_v14  ;;  %2133 = vmatprep.subr.bf16.mxu0 %v2132_v47  ;;  %v2136_v55 = vpack.c.bf16 %v1573_v46, %v1572_v7 }
 0x272   : > { %1270 = vmatmul.mubr.f32.gmra.mrb[28].mxu1 %v1092_v50  ;;  %2158 = vmatprep.subr.bf16.mxu1 %v2132_v47 }
 0x273   : > { %v1095_v26 = vadd.f32 %v3076_v19, %v1051_v60  ;;  %v1094_v33 = vadd.f32 %v3071_v16, %v1050_v25 }
 0x274   : > { %2135 = vmatpush3.bf16.msra.mxu0 %v2132_v47  ;;  %2166 = vmatpush3.bf16.msra.mxu1 %v2132_v47 }
 0x275   : > { %1274 = vmatprep.mubr.f32.mxu1 %v1095_v26  ;;  %2137 = vmatprep.subr.bf16.mxu0 %v2136_v55 }
 0x276   : > { %1275 = vmatmul.mubr.f32.gmra.mrb[30].mxu1 %v1094_v33  ;;  %v1574_v33 = vld [vmem:[#allocation8 + $0x40] sm:$0xff]  ;;  %2159 = vmatprep.subr.bf16.mxu1 %v2136_v55 }
 0x278   : > { %2139 = vmatpush3.bf16.msra.mxu0 %v2136_v55  ;;  %2167 = vmatpush3.bf16.msra.mxu1 %v2136_v55 }
 0x30d   : > { %v1924_v59 = vpop.f32.mrb[0].mxu1 }
 0x30e   : > { %v1925_v6 = vpop.f32.mrb[1].mxu1 }
 0x30f   : > { %v1926_v48 = vadd.f32 %v1925_v6, %v1924_v59  ;;  %v1575_v59 = vld [vmem:[#allocation8 + $0x48] sm:$0xff] }
 0x311   : > { %v1202_v62 = vadd.f32 %v1926_v48, %v3245_v28  ;;  %v1927_v3 = vpop.f32.mrb[2].mxu1 }
 0x312   : > { %v1928_v2 = vpop.f32.mrb[3].mxu1 }
 0x313   : > { %v3248_v1 = vmax.f32 %v1202_v62, 0.0  ;;  %v1929_v27 = vadd.f32 %v1928_v2, %v1927_v3  ;;  %v2140_v3 = vpack.c.bf16 %v1575_v59, %v1574_v33 }
 0x315   : > { %1296 = vadd.xlane.f32.xlu0 %v3248_v1  ;;  %v1930_v16 = vpop.f32.mrb[4].mxu1  ;;  %v1207_v19 = vadd.f32 %v1929_v27, %v3245_v28  ;;  %v1328_v57 = vmul.f32 %v3248_v1, %v3248_v1  ;;  %2141 = vmatprep.subr.bf16.mxu0 %v2140_v3 }
 0x316   : > { %v1931_v56 = vpop.f32.mrb[5].mxu1  ;;  %2143 = vmatpush3.bf16.msra.mxu0 %v2140_v3  ;;  %2160 = vmatprep.subr.bf16.mxu1 %v2140_v3 }
 0x317   : > { %v1932_v44 = vadd.f32 %v1931_v56, %v1930_v16  ;;  %v3254_v8 = vmax.f32 %v1207_v19, 0.0  ;;  %v1576_v19 = vld [vmem:[#allocation8 + $0x50] sm:$0xff]  ;;  %v1577_v56 = vld [vmem:[#allocation8 + $0x58] sm:$0xff]  ;;  %2168 = vmatpush3.bf16.msra.mxu1 %v2140_v3 }
 0x319   : > { %1344 = vadd.xlane.f32.xlu0 %v1328_v57  ;;  %v1933_v61 = vpop.f32.mrb[6].mxu1  ;;  %v1212_v21 = vadd.f32 %v1932_v44, %v3245_v28  ;;  %v1329_v20 = vmul.f32 %v3254_v8, %v3254_v8 }
 0x31a   : > { %v1934_v11 = vpop.f32.mrb[7].mxu1 }
 0x31b   : > { %v1935_v17 = vadd.f32 %v1934_v11, %v1933_v61  ;;  %v3260_v9 = vmax.f32 %v1212_v21, 0.0  ;;  %v2144_v61 = vpack.c.bf16 %v1577_v56, %v1576_v19 }
 0x31d   : > { %1298 = vadd.xlane.f32.xlu0 %v3254_v8  ;;  %v1936_v15 = vpop.f32.mrb[8].mxu1  ;;  %v1217_v41 = vadd.f32 %v1935_v17, %v3245_v28  ;;  %v1330_v58 = vmul.f32 %v3260_v9, %v3260_v9  ;;  %2145 = vmatprep.subr.bf16.mxu0 %v2144_v61 }
 0x31e   : > { %v1937_v23 = vpop.f32.mrb[9].mxu1  ;;  %2147 = vmatpush3.bf16.msra.mxu0 %v2144_v61  ;;  %2161 = vmatprep.subr.bf16.mxu1 %v2144_v61 }
 0x31f   : > { %v1938_v24 = vadd.f32 %v1937_v23, %v1936_v15  ;;  %v3268_v13 = vmax.f32 %v1217_v41, 0.0  ;;  %v1578_v23 = vld [vmem:[#allocation8 + $0x60] sm:$0xff]  ;;  %2169 = vmatpush3.bf16.msra.mxu1 %v2144_v61 }
 0x321   : > { %1346 = vadd.xlane.f32.xlu0 %v1329_v20  ;;  %v1939_v22 = vpop.f32.mrb[10].mxu1  ;;  %v1222_v51 = vadd.f32 %v1938_v24, %v3245_v28  ;;  %v1331_v52 = vmul.f32 %v3268_v13, %v3268_v13  ;;  %v1579_v20 = vld [vmem:[#allocation8 + $0x68] sm:$0xff] }
 0x322   : > { %v1940_v18 = vpop.f32.mrb[11].mxu1 }
 0x323   : > { %v1941_v34 = vadd.f32 %v1940_v18, %v1939_v22  ;;  %v3277_v4 = vmax.f32 %v1222_v51, 0.0 }
 0x325   : > { %1300 = vadd.xlane.f32.xlu0 %v3260_v9  ;;  %v1942_v42 = vpop.f32.mrb[12].mxu1  ;;  %v1227_v60 = vadd.f32 %v1941_v34, %v3245_v28  ;;  %v1332_v26 = vmul.f32 %v3277_v4, %v3277_v4  ;;  %v2148_v34 = vpack.c.bf16 %v1579_v20, %v1578_v23 }
 0x326   : > { %v1943_v29 = vpop.f32.mrb[13].mxu1 }
 0x327   : > { %v3266_v39 = vadd.f32 %v1943_v29, %v1942_v42  ;;  %v3289_v27 = vmax.f32 %v1227_v60, 0.0  ;;  %2149 = vmatprep.subr.bf16.mxu0 %v2148_v34  ;;  %2162 = vmatprep.subr.bf16.mxu1 %v2148_v34 }
 0x328   : > { %2151 = vmatpush3.bf16.msra.mxu0 %v2148_v34  ;;  %2170 = vmatpush3.bf16.msra.mxu1 %v2148_v34 }
 0x329   : > { %1348 = vadd.xlane.f32.xlu0 %v1330_v58  ;;  %v1945_v32 = vpop.f32.mrb[14].mxu1  ;;  %v1232_v17 = vadd.f32 %v3266_v39, %v3245_v28  ;;  %v1333_v21 = vmul.f32 %v3289_v27, %v3289_v27 }
 0x32a   : > { %v1946_v10 = vpop.f32.mrb[15].mxu1 }
 0x32b   : > { %v3270_v35 = vadd.f32 %v1946_v10, %v1945_v32  ;;  %v3303_v29 = vmax.f32 %v1232_v17, 0.0  ;;  %v2152_v32 = vpack.c.bf16 %v1581_v38, %v1580_v0 }
 0x32d   : > { %1302 = vadd.xlane.f32.xlu0 %v3268_v13  ;;  %v1948_v63 = vpop.f32.mrb[16].mxu1  ;;  %2153 = vmatprep.subr.bf16.mxu0 %v2152_v32  ;;  %v1237_v30 = vadd.f32 %v3270_v35, %v3245_v28 }
 0x32e   : > { %v1949_v53 = vpop.f32.mrb[17].mxu1  ;;  %2155 = vmatpush3.bf16.msra.mxu0 %v2152_v32  ;;  %2163 = vmatprep.subr.bf16.mxu1 %v2152_v32 }
 0x32f   : > { %v1950_v45 = vadd.f32 %v1949_v53, %v1948_v63  ;;  %v1334_v63 = vmul.f32 %v3303_v29, %v3303_v29  ;;  %2171 = vmatpush3.bf16.msra.mxu1 %v2152_v32 }
 0x331   : > { %1350 = vadd.xlane.f32.xlu0 %v1331_v52  ;;  %v1242_v12 = vadd.f32 %v1950_v45, %v3245_v28  ;;  %v1951_v54 = vpop.f32.mrb[18].mxu1  ;;  %v3318_v45 = vmax.f32 %v1237_v30, 0.0 }
 0x332   : > { %v1952_v5 = vpop.f32.mrb[19].mxu1 }
 0x333   : > { %v3279_v49 = vmax.f32 %v1242_v12, 0.0  ;;  %v1953_v50 = vadd.f32 %v1952_v5, %v1951_v54  ;;  %v1335_v5 = vmul.f32 %v3318_v45, %v3318_v45 }
 0x335   : > { %1304 = vadd.xlane.f32.xlu0 %v3277_v4  ;;  %1312 = vadd.xlane.f32.xlu1 %v3279_v49  ;;  %v1954_v14 = vpop.f32.mrb[20].mxu1  ;;  %v1247_v6 = vadd.f32 %v1953_v50, %v3245_v28  ;;  %v1336_v62 = vmul.f32 %v3279_v49, %v3279_v49 }
 0x336   : > { %v1955_v25 = vpop.f32.mrb[21].mxu1 }
 0x337   : > { %v1956_v48 = vadd.f32 %v1955_v25, %v1954_v14  ;;  %v3291_v57 = vmax.f32 %v1247_v6, 0.0 }
 0x339   : > { %1352 = vadd.xlane.f32.xlu0 %v1332_v26  ;;  %1360 = vadd.xlane.f32.xlu1 %v1336_v62  ;;  %v1957_v2 = vpop.f32.mrb[22].mxu1  ;;  %v1252_v24 = vadd.f32 %v1956_v48, %v3245_v28  ;;  %v1337_v18 = vmul.f32 %v3291_v57, %v3291_v57 }
 0x33a   : > { %v1958_v16 = vpop.f32.mrb[23].mxu1 }
 0x33b   : > { %v1959_v44 = vadd.f32 %v1958_v16, %v1957_v2  ;;  %v3305_v39 = vmax.f32 %v1252_v24, 0.0 }
 0x33d   : > { %1306 = vadd.xlane.f32.xlu0 %v3289_v27  ;;  %1314 = vadd.xlane.f32.xlu1 %v3291_v57  ;;  %v1960_v11 = vpop.f32.mrb[24].mxu1  ;;  %v1257_v51 = vadd.f32 %v1959_v44, %v3245_v28  ;;  %v1338_v52 = vmul.f32 %v3305_v39, %v3305_v39 }
 0x33e   : > { %v1961_v15 = vpop.f32.mrb[25].mxu1 }
 0x33f   : > { %v1962_v22 = vadd.f32 %v1961_v15, %v1960_v11  ;;  %v3320_v47 = vmax.f32 %v1257_v51, 0.0 }
 0x341   : > { %1354 = vadd.xlane.f32.xlu0 %v1333_v21  ;;  %v1262_v42 = vadd.f32 %v1962_v22, %v3245_v28  ;;  %1362 = vadd.xlane.f32.xlu1 %v1337_v18  ;;  %v1963_v41 = vpop.f32.mrb[26].mxu1  ;;  %v1339_v7 = vmul.f32 %v3320_v47, %v3320_v47 }
 0x342   : > { %v1964_v58 = vpop.f32.mrb[27].mxu1 }
 0x343   : > { %v1965_v40 = vadd.f32 %v1964_v58, %v1963_v41  ;;  %v3329_v46 = vmax.f32 %v1262_v42, 0.0  ;;  %v3353_v58 = vld [vmem:[%s3528_s7] ss:$0 sm:$0xff] }
 0x345   : > { %1308 = vadd.xlane.f32.xlu0 %v3303_v29  ;;  %v1267_v10 = vadd.f32 %v1965_v40, %v3245_v28  ;;  %1316 = vadd.xlane.f32.xlu1 %v3305_v39  ;;  %v1966_v36 = vpop.f32.mrb[28].mxu1  ;;  %v1340_v50 = vmul.f32 %v3329_v46, %v3329_v46 }
 0x346   : > { %v1967_v37 = vpop.f32.mrb[29].mxu1 }
 0x347   : > { %v1968_v53 = vadd.f32 %v1967_v37, %v1966_v36  ;;  %v3334_v55 = vmax.f32 %v1267_v10, 0.0  ;;  %v3358_v10 = vld [vmem:[%s3560_s29] ss:$0 sm:$0xff] }
 0x349   : > { %1356 = vadd.xlane.f32.xlu0 %v1334_v63  ;;  %v1272_v31 = vadd.f32 %v1968_v53, %v3245_v28  ;;  %1364 = vadd.xlane.f32.xlu1 %v1338_v52  ;;  %v1969_v43 = vpop.f32.mrb[30].mxu1 }
 0x34a   : > { %v1970_v35 = vpop.f32.mrb[31].mxu1 }
 0x34b   : > { %v1971_v12 = vadd.f32 %v1970_v35, %v1969_v43  ;;  %v3339_v14 = vmax.f32 %v1272_v31, 0.0 }
 0x34d   : > { %1310 = vadd.xlane.f32.xlu0 %v3318_v45  ;;  %v1277_v54 = vadd.f32 %v1971_v12, %v3245_v28  ;;  %1318 = vadd.xlane.f32.xlu1 %v3320_v47  ;;  %v1341_v28 = vmul.f32 %v3334_v55, %v3334_v55  ;;  %v1342_v60 = vmul.f32 %v3339_v14, %v3339_v14 }
 0x34f   : > { %v3344_v25 = vmax.f32 %v1277_v54, 0.0 }
 0x351   : > { %1358 = vadd.xlane.f32.xlu0 %v1335_v5  ;;  %1366 = vadd.xlane.f32.xlu1 %v1339_v7  ;;  %v1343_v26 = vmul.f32 %v3344_v25, %v3344_v25 }
 0x355   : > { %1320 = vadd.xlane.f32.xlu1 %v3329_v46 }
 0x359   : > { %1368 = vadd.xlane.f32.xlu1 %v1340_v50 }
 0x35d   : > { %1322 = vadd.xlane.f32.xlu1 %v3334_v55 }
 0x361   : > { %1370 = vadd.xlane.f32.xlu1 %v1341_v28 }
 0x365   : > { %1324 = vadd.xlane.f32.xlu1 %v3339_v14 }
 0x369   : > { %1372 = vadd.xlane.f32.xlu1 %v1342_v60 }
 0x36d   : > { %1326 = vadd.xlane.f32.xlu1 %v3344_v25 }
 0x371   : > { %1374 = vadd.xlane.f32.xlu1 %v1343_v26 }
 0x3a2   : > { %v1297_v33 = vpop.xlane.xlu0 %1296 }
 0x3a3   : > { %v1376_v59 = vmul.f32 0.0078125, %v1297_v33 }
 0x3a5   : > { %v1408_v48 = vmul.f32 %v1376_v59, %v1376_v59  ;;  %v1456_v34 = vsub.f32 %v3248_v1, %v1376_v59 }
 0x3a6   : > { %v1345_v6 = vpop.xlane.xlu0 %1344 }
 0x3a7   : > { %v1392_v62 = vmul.f32 0.0078125, %v1345_v6 }
 0x3a9   : > { %v1424_v3 = vsub.f32 %v1392_v62, %v1408_v48 }
 0x3aa   : > { %v1299_v2 = vpop.xlane.xlu0 %1298 }
 0x3ab   : > { %v1440_v16 = vmax.f32 %v1424_v3, 0.0  ;;  %v1377_v19 = vmul.f32 0.0078125, %v1299_v2 }
 0x3ad   : > { %v1472_v56 = vadd.f32 1e-05, %v1440_v16  ;;  %v1409_v61 = vmul.f32 %v1377_v19, %v1377_v19  ;;  %v1457_v53 = vsub.f32 %v3254_v8, %v1377_v19 }
 0x3ae   : > { %v1347_v44 = vpop.xlane.xlu0 %1346 }
 0x3af   : > { %2288 = vrsqrt.f32 %v1472_v56  ;;  %v1393_v11 = vmul.f32 0.0078125, %v1347_v44 }
 0x3b1   : > { %v1425_v17 = vsub.f32 %v1393_v11, %v1409_v61 }
 0x3b2   : > { %v1301_v15 = vpop.xlane.xlu0 %1300 }
 0x3b3   : > { %v1441_v21 = vmax.f32 %v1425_v17, 0.0  ;;  %v1378_v23 = vmul.f32 0.0078125, %v1301_v15 }
 0x3b5   : > { %v1473_v20 = vadd.f32 1e-05, %v1441_v21  ;;  %v1410_v22 = vmul.f32 %v1378_v23, %v1378_v23  ;;  %v1458_v6 = vsub.f32 %v3260_v9, %v1378_v23 }
 0x3b6   : > { %v1349_v24 = vpop.xlane.xlu0 %1348 }
 0x3b7   : > { %2290 = vrsqrt.f32 %v1473_v20  ;;  %v1394_v18 = vmul.f32 0.0078125, %v1349_v24 }
 0x3b9   : > { %v2289_v42 = vpop.eup %2288  ;;  %v1426_v41 = vsub.f32 %v1394_v18, %v1410_v22 }
 0x3ba   : > { %v1303_v0 = vpop.xlane.xlu0 %1302  ;;  %v1504_v38 = vmul.f32 %v2289_v42, %v1456_v34 }
 0x3bb   : > { %v1442_v40 = vmax.f32 %v1426_v41, 0.0  ;;  %v1379_v32 = vmul.f32 0.0078125, %v1303_v0 }
 0x3bc   : > { %v1527_v36 = vmul.f32 %v3353_v58, %v1504_v38 }
 0x3bd   : > { %v1474_v30 = vadd.f32 1e-05, %v1442_v40  ;;  %v1411_v63 = vmul.f32 %v1379_v32, %v1379_v32  ;;  %v1459_v42 = vsub.f32 %v3268_v13, %v1379_v32 }
 0x3be   : > { %v1351_v1 = vpop.xlane.xlu0 %1350  ;;  %v1550_v37 = vadd.f32 %v3358_v10, %v1527_v36 }
 0x3bf   : > { %2292 = vrsqrt.f32 %v1474_v30  ;;  %v1395_v51 = vmul.f32 0.0078125, %v1351_v1 }
 0x3c0   : > { %2036 = vmatprep.mubr.f32.mxu0 %v1550_v37 }
 0x3c1   : > { %v2291_v52 = vpop.eup %2290  ;;  %v1427_v31 = vsub.f32 %v1395_v51, %v1411_v63 }
 0x3c2   : > { %v1505_v43 = vmul.f32 %v2291_v52, %v1457_v53  ;;  %v1305_v35 = vpop.xlane.xlu0 %1304  ;;  %v1313_v54 = vpop.xlane.xlu1 %1312 }
 0x3c3   : > { %v1443_v12 = vmax.f32 %v1427_v31, 0.0  ;;  %v3363_v5 = vmul.f32 0.0078125, %v1305_v35  ;;  %v3365_v7 = vmul.f32 0.0078125, %v1313_v54 }
 0x3c4   : > { %v1528_v50 = vmul.f32 %v3353_v58, %v1505_v43 }
 0x3c5   : > { %v1475_v28 = vadd.f32 1e-05, %v1443_v12  ;;  %v1412_v8 = vmul.f32 %v3363_v5, %v3363_v5  ;;  %v1416_v48 = vmul.f32 %v3365_v7, %v3365_v7 }
 0x3c6   : > { %v1353_v60 = vpop.xlane.xlu0 %1352  ;;  %v1551_v26 = vadd.f32 %v3358_v10, %v1528_v50  ;;  %v1361_v33 = vpop.xlane.xlu1 %1360 }
 0x3c7   : > { %2294 = vrsqrt.f32 %v1475_v28  ;;  %v1396_v59 = vmul.f32 0.0078125, %v1353_v60  ;;  %v1400_v62 = vmul.f32 0.0078125, %v1361_v33  ;;  %v1460_v28 = vsub.f32 %v3277_v4, %v3363_v5 }
 0x3c8   : > { %2037 = vmatmul.mubr.f32.vlgmr.msra.gmra.mrb[32].mxu0 %v1551_v26  ;;  %v1464_v33 = vsub.f32 %v3279_v49, %v3365_v7 }
 0x3c9   : > { %v2293_v3 = vpop.eup %2292  ;;  %v1428_v2 = vsub.f32 %v1396_v59, %v1412_v8  ;;  %v1432_v16 = vsub.f32 %v1400_v62, %v1416_v48 }
 0x3ca   : > { %v1307_v19 = vpop.xlane.xlu0 %1306  ;;  %v1506_v56 = vmul.f32 %v2293_v3, %v1458_v6  ;;  %v1315_v61 = vpop.xlane.xlu1 %1314 }
 0x3cb   : > { %v1444_v44 = vmax.f32 %v1428_v2, 0.0  ;;  %v3374_v11 = vmul.f32 0.0078125, %v1307_v19  ;;  %v1448_v17 = vmax.f32 %v1432_v16, 0.0  ;;  %v3376_v15 = vmul.f32 0.0078125, %v1315_v61 }
 0x3cc   : > { %v1529_v21 = vmul.f32 %v3353_v58, %v1506_v56 }
 0x3cd   : > { %v1476_v9 = vadd.f32 1e-05, %v1444_v44  ;;  %v1480_v23 = vadd.f32 1e-05, %v1448_v17  ;;  %v1413_v22 = vmul.f32 %v3374_v11, %v3374_v11  ;;  %v1417_v41 = vmul.f32 %v3376_v15, %v3376_v15 }
 0x3ce   : > { %v1355_v20 = vpop.xlane.xlu0 %1354  ;;  %v1552_v24 = vadd.f32 %v3358_v10, %v1529_v21  ;;  %v1363_v18 = vpop.xlane.xlu1 %1362 }
 0x3cf   : > { %2296 = vrsqrt.f32 %v1476_v9  ;;  %v1397_v34 = vmul.f32 0.0078125, %v1355_v20  ;;  %v1401_v0 = vmul.f32 0.0078125, %v1363_v18 }
 0x3d0   : > { %2298 = vrsqrt.f32 %v1480_v23  ;;  %2039 = vmatprep.mubr.f32.mxu0 %v1552_v24 }
 0x3d1   : > { %v2295_v38 = vpop.eup %2294  ;;  %v1429_v40 = vsub.f32 %v1397_v34, %v1413_v22  ;;  %v1433_v36 = vsub.f32 %v1401_v0, %v1417_v41  ;;  %v1461_v22 = vsub.f32 %v3289_v27, %v3374_v11  ;;  %v1465_v41 = vsub.f32 %v3291_v57, %v3376_v15 }
 0x3d2   : > { %v1309_v30 = vpop.xlane.xlu0 %1308  ;;  %v1507_v1 = vmul.f32 %v2295_v38, %v1459_v42  ;;  %v1317_v63 = vpop.xlane.xlu1 %1316 }
 0x3d3   : > { %v1445_v37 = vmax.f32 %v1429_v40, 0.0  ;;  %v3385_v51 = vmul.f32 0.0078125, %v1309_v30  ;;  %v1449_v53 = vmax.f32 %v1433_v36, 0.0  ;;  %v3387_v52 = vmul.f32 0.0078125, %v1317_v63 }
 0x3d4   : > { %v1530_v13 = vmul.f32 %v3353_v58, %v1507_v1 }
 0x3d5   : > { %v1477_v32 = vadd.f32 1e-05, %v1445_v37  ;;  %v1481_v31 = vadd.f32 1e-05, %v1449_v53  ;;  %v1414_v12 = vmul.f32 %v3385_v51, %v3385_v51  ;;  %v1418_v60 = vmul.f32 %v3387_v52, %v3387_v52 }
 0x3d6   : > { %v1357_v43 = vpop.xlane.xlu0 %1356  ;;  %v1553_v35 = vadd.f32 %v3358_v10, %v1530_v13  ;;  %v1365_v54 = vpop.xlane.xlu1 %1364 }
 0x3d7   : > { %2300 = vrsqrt.f32 %v1477_v32  ;;  %v1398_v50 = vmul.f32 0.0078125, %v1357_v43  ;;  %v1402_v26 = vmul.f32 0.0078125, %v1365_v54  ;;  %v1462_v43 = vsub.f32 %v3303_v29, %v3385_v51 }
 0x3d8   : > { %2302 = vrsqrt.f32 %v1481_v31  ;;  %2040 = vmatmul.mubr.f32.gmra.mrb[34].mxu0 %v1553_v35 }
 0x3d9   : > { %v2297_v8 = vpop.eup %2296  ;;  %v1430_v59 = vsub.f32 %v1398_v50, %v1414_v12  ;;  %v1434_v48 = vsub.f32 %v1402_v26, %v1418_v60  ;;  %v1466_v50 = vsub.f32 %v3305_v39, %v3387_v52 }
 0x3da   : > { %v2299_v6 = vpop.eup %2298  ;;  %v1311_v62 = vpop.xlane.xlu0 %1310  ;;  %v1508_v3 = vmul.f32 %v2297_v8, %v1460_v28 }
 0x3db   : > { %v1446_v2 = vmax.f32 %v1430_v59, 0.0  ;;  %v1319_v16 = vpop.xlane.xlu1 %1318  ;;  %v3399_v19 = vmul.f32 0.0078125, %v1311_v62  ;;  %v1512_v4 = vmul.f32 %v2299_v6, %v1464_v33  ;;  %v1450_v5 = vmax.f32 %v1434_v48, 0.0 }
 0x3dc   : > { %v3401_v56 = vmul.f32 0.0078125, %v1319_v16  ;;  %v1531_v44 = vmul.f32 %v3353_v58, %v1508_v3 }
 0x3dd   : > { %v1478_v61 = vadd.f32 1e-05, %v1446_v2  ;;  %v1535_v17 = vmul.f32 %v3353_v58, %v1512_v4  ;;  %v1482_v21 = vadd.f32 1e-05, %v1450_v5  ;;  %v1415_v9 = vmul.f32 %v3399_v19, %v3399_v19 }
 0x3de   : > { %v1359_v49 = vpop.xlane.xlu0 %1358  ;;  %v1554_v7 = vadd.f32 %v3358_v10, %v1531_v44  ;;  %v1419_v18 = vmul.f32 %v3401_v56, %v3401_v56  ;;  %v1463_v39 = vsub.f32 %v3318_v45, %v3399_v19  ;;  %v1467_v5 = vsub.f32 %v3320_v47, %v3401_v56 }
 0x3df   : > { %2304 = vrsqrt.f32 %v1478_v61  ;;  %v1367_v23 = vpop.xlane.xlu1 %1366  ;;  %v1399_v20 = vmul.f32 0.0078125, %v1359_v49  ;;  %v1558_v24 = vadd.f32 %v3358_v10, %v1535_v17 }
 0x3e0   : > { %2306 = vrsqrt.f32 %v1482_v21  ;;  %v1403_v34 = vmul.f32 0.0078125, %v1367_v23  ;;  %2042 = vmatprep.mubr.f32.mxu0 %v1554_v7 }
 0x3e1   : > { %v2301_v42 = vpop.eup %2300  ;;  %v1431_v0 = vsub.f32 %v1399_v20, %v1415_v9  ;;  %2048 = vmatprep.mubr.f32.mxu1 %v1558_v24 }
 0x3e2   : > { %v2303_v38 = vpop.eup %2302  ;;  %v1435_v40 = vsub.f32 %v1403_v34, %v1419_v18  ;;  %v1509_v36 = vmul.f32 %v2301_v42, %v1461_v22 }
 0x3e3   : > { %v1513_v30 = vmul.f32 %v2303_v38, %v1465_v41  ;;  %v1447_v1 = vmax.f32 %v1431_v0, 0.0  ;;  %v1321_v37 = vpop.xlane.xlu1 %1320 }
 0x3e4   : > { %v1451_v63 = vmax.f32 %v1435_v40, 0.0  ;;  %v1388_v27 = vmul.f32 0.0078125, %v1321_v37  ;;  %v1532_v11 = vmul.f32 %v3353_v58, %v1509_v36 }
 0x3e5   : > { %v1479_v53 = vadd.f32 1e-05, %v1447_v1  ;;  %v1536_v13 = vmul.f32 %v3353_v58, %v1513_v30 }
 0x3e6   : > { %v1483_v32 = vadd.f32 1e-05, %v1451_v63  ;;  %v1555_v31 = vadd.f32 %v3358_v10, %v1532_v11  ;;  %v1420_v35 = vmul.f32 %v1388_v27, %v1388_v27  ;;  %v1468_v18 = vsub.f32 %v3329_v46, %v1388_v27 }
 0x3e7   : > { %2308 = vrsqrt.f32 %v1479_v53  ;;  %v1369_v57 = vpop.xlane.xlu1 %1368  ;;  %v1559_v15 = vadd.f32 %v3358_v10, %v1536_v13 }
 0x3e8   : > { %2310 = vrsqrt.f32 %v1483_v32  ;;  %v1404_v12 = vmul.f32 0.0078125, %v1369_v57  ;;  %2043 = vmatmul.mubr.f32.gmra.mrb[36].mxu0 %v1555_v31 }
 0x3e9   : > { %v2305_v54 = vpop.eup %2304  ;;  %2049 = vmatmul.mubr.f32.vlgmr.msra.gmra.mrb[32].mxu1 %v1559_v15 }
 0x3ea   : > { %v2307_v28 = vpop.eup %2306  ;;  %v1436_v60 = vsub.f32 %v1404_v12, %v1420_v35  ;;  %v1510_v26 = vmul.f32 %v2305_v54, %v1462_v43 }
 0x3eb   : > { %v1323_v8 = vpop.xlane.xlu1 %1322  ;;  %v1514_v33 = vmul.f32 %v2307_v28, %v1466_v50 }
 0x3ec   : > { %v1452_v59 = vmax.f32 %v1436_v60, 0.0  ;;  %v1389_v6 = vmul.f32 0.0078125, %v1323_v8  ;;  %v1533_v48 = vmul.f32 %v3353_v58, %v1510_v26 }
 0x3ed   : > { %v1537_v29 = vmul.f32 %v3353_v58, %v1514_v33 }
 0x3ee   : > { %v1484_v51 = vadd.f32 1e-05, %v1452_v59  ;;  %v1556_v62 = vadd.f32 %v3358_v10, %v1533_v48  ;;  %v1421_v52 = vmul.f32 %v1389_v6, %v1389_v6  ;;  %v1469_v53 = vsub.f32 %v3334_v55, %v1389_v6 }
 0x3ef   : > { %v1371_v3 = vpop.xlane.xlu1 %1370  ;;  %v1560_v2 = vadd.f32 %v3358_v10, %v1537_v29 }
 0x3f0   : > { %2312 = vrsqrt.f32 %v1484_v51  ;;  %v1405_v16 = vmul.f32 0.0078125, %v1371_v3  ;;  %2045 = vmatprep.mubr.f32.mxu0 %v1556_v62 }
 0x3f1   : > { %v2309_v4 = vpop.eup %2308  ;;  %2051 = vmatprep.mubr.f32.mxu1 %v1560_v2 }
 0x3f2   : > { %v2311_v44 = vpop.eup %2310  ;;  %v1437_v61 = vsub.f32 %v1405_v16, %v1421_v52  ;;  %v1511_v17 = vmul.f32 %v2309_v4, %v1463_v39 }
 0x3f3   : > { %v1325_v21 = vpop.xlane.xlu1 %1324  ;;  %v1515_v49 = vmul.f32 %v2311_v44, %v1467_v5 }
 0x3f4   : > { %v1453_v7 = vmax.f32 %v1437_v61, 0.0  ;;  %v1390_v9 = vmul.f32 0.0078125, %v1325_v21  ;;  %v1534_v23 = vmul.f32 %v3353_v58, %v1511_v17 }
 0x3f5   : > { %v1538_v45 = vmul.f32 %v3353_v58, %v1515_v49 }
 0x3f6   : > { %v1485_v19 = vadd.f32 1e-05, %v1453_v7  ;;  %v1557_v20 = vadd.f32 %v3358_v10, %v1534_v23  ;;  %v1422_v47 = vmul.f32 %v1390_v9, %v1390_v9  ;;  %v1470_v43 = vsub.f32 %v3339_v14, %v1390_v9  ;;  %v1884_v14 = vld [vmem:[%s3561_s25] ss:$0 sm:$0xff] }
 0x3f7   : > { %v1373_v24 = vpop.xlane.xlu1 %1372  ;;  %v1561_v22 = vadd.f32 %v3358_v10, %v1538_v45 }
 0x3f8   : > { %2314 = vrsqrt.f32 %v1485_v19  ;;  %v1406_v56 = vmul.f32 0.0078125, %v1373_v24  ;;  %2046 = vmatmul.mubr.f32.gmra.mrb[38].mxu0 %v1557_v20 }
 0x3f9   : > { %2052 = vmatmul.mubr.f32.gmra.mrb[34].mxu1 %v1561_v22 }
 0x3fa   : > { %v2313_v34 = vpop.eup %2312  ;;  %v1438_v42 = vsub.f32 %v1406_v56, %v1422_v47 }
 0x3fb   : > { %v1327_v41 = vpop.xlane.xlu1 %1326  ;;  %v1516_v0 = vmul.f32 %v2313_v34, %v1468_v18 }
 0x3fc   : > { %v1454_v38 = vmax.f32 %v1438_v42, 0.0  ;;  %v1391_v40 = vmul.f32 0.0078125, %v1327_v41 }
 0x3fd   : > { %v1539_v36 = vmul.f32 %v3353_v58, %v1516_v0 }
 0x3fe   : > { %v1486_v30 = vadd.f32 1e-05, %v1454_v38  ;;  %v1423_v63 = vmul.f32 %v1391_v40, %v1391_v40  ;;  %v1471_v50 = vsub.f32 %v3344_v25, %v1391_v40 }
 0x3ff   : > { %v1375_v1 = vpop.xlane.xlu1 %1374  ;;  %v1562_v37 = vadd.f32 %v3358_v10, %v1539_v36 }
 0x400   : > { %2316 = vrsqrt.f32 %v1486_v30  ;;  %v1407_v11 = vmul.f32 0.0078125, %v1375_v1 }
 0x401   : > { %2054 = vmatprep.mubr.f32.mxu1 %v1562_v37 }
 0x402   : > { %v2315_v46 = vpop.eup %2314  ;;  %v1439_v27 = vsub.f32 %v1407_v11, %v1423_v63 }
 0x403   : > { %v1517_v13 = vmul.f32 %v2315_v46, %v1469_v53 }
 0x404   : > { %v1455_v32 = vmax.f32 %v1439_v27, 0.0 }
 0x405   : > { %v1540_v31 = vmul.f32 %v3353_v58, %v1517_v13 }
 0x406   : > { %v1487_v57 = vadd.f32 1e-05, %v1455_v32 }
 0x407   : > { %v1563_v15 = vadd.f32 %v3358_v10, %v1540_v31 }
 0x408   : > { %2318 = vrsqrt.f32 %v1487_v57 }
 0x409   : > { %2055 = vmatmul.mubr.f32.gmra.mrb[36].mxu1 %v1563_v15 }
 0x40a   : > { %v2317_v35 = vpop.eup %2316 }
 0x40b   : > { %v1518_v12 = vmul.f32 %v2317_v35, %v1470_v43 }
 0x40d   : > { %v1541_v54 = vmul.f32 %v3353_v58, %v1518_v12 }
 0x40f   : > { %v1564_v55 = vadd.f32 %v3358_v10, %v1541_v54 }
 0x411   : > { %2057 = vmatprep.mubr.f32.mxu1 %v1564_v55 }
 0x412   : > { %v2319_v28 = vpop.eup %2318 }
 0x413   : > { %v1519_v60 = vmul.f32 %v2319_v28, %v1471_v50 }
 0x415   : > { %v1542_v26 = vmul.f32 %v3353_v58, %v1519_v60 }
 0x417   : > { %v1565_v8 = vadd.f32 %v3358_v10, %v1542_v26 }
 0x419   : > { %2058 = vmatmul.mubr.f32.gmra.mrb[38].mxu1 %v1565_v8 }
 0x49b   : > { %v2038_v33 = vpop.f32.mrb[32].mxu0 }
 0x49c   : > { %v1661_v59 = vadd.f32 %v2038_v33, %v1884_v14  ;;  %v1655_v6 = vpop.f32.mrb[33].mxu0 }
 0x49d   : > { %v1656_v48 = vadd.f32 %v1884_v14, %v1655_v6 }
 0x49e   : > { %1735 = vst [vmem:[%s3452_s11 + $0x8] sm:$0xff] %v1661_v59 }
 0x49f   : > { %1734 = vst [vmem:[%s3452_s11] sm:$0xff] %v1656_v48 }
 0x4ab   : > { %v2041_v25 = vpop.f32.mrb[34].mxu0 }
 0x4ac   : > { %v1671_v58 = vadd.f32 %v2041_v25, %v1884_v14  ;;  %v1665_v10 = vpop.f32.mrb[35].mxu0 }
 0x4ad   : > { %v1666_v29 = vadd.f32 %v1884_v14, %v1665_v10 }
 0x4ae   : > { %1737 = vst [vmem:[%s3452_s11 + $0x18] sm:$0xff] %v1671_v58 }
 0x4af   : > { %1736 = vst [vmem:[%s3452_s11 + $0x10] sm:$0xff] %v1666_v29 }
 0x4bb   : > { %v2044_v51 = vpop.f32.mrb[36].mxu0 }
 0x4bc   : > { %v1681_v62 = vadd.f32 %v2044_v51, %v1884_v14  ;;  %v2050_v3 = vpop.f32.mrb[32].mxu1  ;;  %v1675_v2 = vpop.f32.mrb[37].mxu0 }
 0x4bd   : > { %v1701_v39 = vadd.f32 %v2050_v3, %v1884_v14  ;;  %v1676_v52 = vadd.f32 %v1884_v14, %v1675_v2  ;;  %v1695_v16 = vpop.f32.mrb[33].mxu1 }
 0x4be   : > { %1739 = vst [vmem:[%s3452_s11 + $0x28] sm:$0xff] %v1681_v62  ;;  %v1696_v4 = vadd.f32 %v1884_v14, %v1695_v16 }
 0x4bf   : > { %1743 = vst [vmem:[%s3452_s11 + $0x48] sm:$0xff] %v1701_v39  ;;  %1738 = vst [vmem:[%s3452_s11 + $0x20] sm:$0xff] %v1676_v52 }
 0x4c0   : > { %1742 = vst [vmem:[%s3452_s11 + $0x40] sm:$0xff] %v1696_v4 }
 0x4cb   : > { %v2047_v5 = vpop.f32.mrb[38].mxu0 }
 0x4cc   : > { %v1691_v44 = vadd.f32 %v2047_v5, %v1884_v14  ;;  %v2053_v61 = vpop.f32.mrb[34].mxu1  ;;  %v1685_v17 = vpop.f32.mrb[39].mxu0 }
 0x4cd   : > { %v1711_v21 = vadd.f32 %v2053_v61, %v1884_v14  ;;  %v1686_v49 = vadd.f32 %v1884_v14, %v1685_v17  ;;  %v1705_v7 = vpop.f32.mrb[35].mxu1 }
 0x4ce   : > { %1741 = vst [vmem:[%s3452_s11 + $0x38] sm:$0xff] %v1691_v44  ;;  %v1706_v9 = vadd.f32 %v1884_v14, %v1705_v7 }
 0x4cf   : > { %1745 = vst [vmem:[%s3452_s11 + $0x58] sm:$0xff] %v1711_v21  ;;  %1740 = vst [vmem:[%s3452_s11 + $0x30] sm:$0xff] %v1686_v49 }
 0x4d0   : > { %1744 = vst [vmem:[%s3452_s11 + $0x50] sm:$0xff] %v1706_v9 }
 0x4dc   : > { %v2056_v23 = vpop.f32.mrb[36].mxu1 }
 0x4dd   : > { %v1721_v45 = vadd.f32 %v2056_v23, %v1884_v14  ;;  %v1715_v19 = vpop.f32.mrb[37].mxu1 }
 0x4de   : > { %v1716_v20 = vadd.f32 %v1884_v14, %v1715_v19 }
 0x4df   : > { %1747 = vst [vmem:[%s3452_s11 + $0x68] sm:$0xff] %v1721_v45 }
 0x4e0   : > { %1746 = vst [vmem:[%s3452_s11 + $0x60] sm:$0xff] %v1716_v20 }
 0x4ec   : > { %v2059_v24 = vpop.f32.mrb[38].mxu1 }
 0x4ed   : > { %v1731_v22 = vadd.f32 %v2059_v24, %v1884_v14  ;;  %v1725_v47 = vpop.f32.mrb[39].mxu1 }
 0x4ee   : > { %v1726_v56 = vadd.f32 %v1884_v14, %v1725_v47 }
 0x4ef   : > { %1749 = vst [vmem:[%s3452_s11 + $0x78] sm:$0xff] %v1731_v22 }
 0x4f0   : > { %1748 = vst [vmem:[%s3452_s11 + $0x70] sm:$0xff] %v1726_v56 }
 0x4f1   : > { %2447 = shalt.err (!%p2444_p4)
}
 0x4f2   : > { %s2448_s29 = scalar_lea.hbm %s3473_s12, 2048  ;;  %s2452_s25 = scalar_lea.hbm %s3562_s8, 4096 }
 0x4f3   : > { %p2449_p9 = scmp.ne.s32.totalorder %s3473_s12, %s2448_s29  ;;  %p2453_p8 = scmp.lt.u32.totalorder %s3473_s12, %s3562_s8 }
 0x4f4   : > { %p2454_p13 = scmp.lt.u32.totalorder %s2452_s25, %s2448_s29  ;;  %p2456_p10 = scmp.lt.u32.totalorder %s2448_s29, %s3473_s12 }
 0x4f5   : > { %p2450_p0 = pnand %p2449_p9, %p2730_p5 }
 0x4f6   : > { %p2455_p6 = por %p2454_p13, %p2453_p8 }
 0x4f7   : > { %p2451_p11 = pneg %p2450_p0 }
 0x4f8   : > { %p2457_p3 = por %p2456_p10, %p2455_p6 }
 0x4fa   : > { %p2458_p7 = pnand %p2457_p3, %p2451_p11 }
 0x4fc   : > { %2461 = shalt.err (!%p2458_p7)
}
 0x4fd   : > { %s2520_s14 = smov 128   ;;  %s2521_s30 = smov 8  }
 0x4fe   : > { %2186 = dma.vmem_to_hbm [thread:$0]  (%p2730_p5), %s3475_s10, 2048, %s3473_s12, %s1751_s13, %s2520_s14, %s2520_s14, %s2521_s30  }
 0x4ff PF: > { %s3563_s27 = sld [smem:[#allocation15_spill]]  ;;  %s3564_s21 = sld [smem:[#allocation16_spill]] }
 0x500   : > { %p3566_p2 = scmp.ge.s32.totalorder %s2508_s20, 2 }
 0x505   : > { %s1779_s28 = sand.u32 1, %s3563_s27   ;;  %p3565_p12 = scmp.ne.s32.totalorder %s3564_s21, 0 }
 0x506   : > { %s1780_s16 = scalar_lea.sflag [#allocation4], %s1779_s28 }
 0x507   : > { %p2203_p1 = pnand %p3566_p2, %p3565_p12 }
 0x509   : > { %2491 = dma.done.wait (!%p2203_p1), %s1780_s16, 2048  }
 0x50a   : > { %2493 = vsyncadd (!%p2203_p1), %s1780_s16, 4294965248  ;;  %s3567_s29 = smov %s2726_s17  ;;  %p26_p4 = scmp.ge.s32.totalorder %s2695_s15, 4  }
 0x50b   : > { %s3568_s17 = smov %s2500_s18  ;;  %s3569_s18 = smov %s2504_s19 }
 0x50c   : > { %s3570_s19 = smov %s3567_s29  ;;  %s3571_s20 = smov %s2695_s15 }
 0x50d   :  { %28 = sbr.rel (!%p26_p4) target bundleno = 12 (0xc), region = 121 }
 0x514   :  { %1785 = vsyncpa [#allocation3], 1 }
 0x515   :  { %1787 = vsyncpa [#allocation3 + $0x1], 1 }
 0x516   :  { %1788 = vsyncpa [#allocation6], 1 }
 0x517   :  { %1789 = vsyncpa [#allocation9], 1 }
 0x518   :  { %1790 = vsyncpa [#allocation4], 1 }
 0x519   :  { %1792 = vsyncpa [#allocation4 + $0x1], 1 }

</bundles_post_ra>
